<compile_context>
chip_gen: v6e
topology: v6e:2x2x1
jax: 0.10.0
libtpu: 0.0.40
codegen_flags: <defaults>
</compile_context>

<pallas_src>
import math

import jax
import jax.numpy as jnp
from jax.experimental import pallas as pl
from jax.experimental.pallas import tpu as pltpu

IN_FEATS = 13 * 13        # 169
HIDDEN = 511
HIDDEN_PAD = 512          # lane-dense padded hidden width (zero-padded weights)
PATCH = (13, 13)
TILE_B = 256              # batch rows per grid step (256-1024 recommended)


def mlp2_kernel(x_ref,
                w1_ref, b1_ref,
                w2_ref, b2_ref,
                w3_ref, b3_ref,
                w4_ref, b4_ref,
                w5_ref, b5_ref,
                o_ref):
    """One batch tile of the fused 5-layer MLP.

    x_ref:  (TB, 169) f32
    wK_ref: (in_dim, out_dim) bf16 (pre-transposed, hidden dims padded to 512)
    bK_ref: (1, out_dim) f32
    o_ref:  (TB, 169) f32
    """
    # input_layer: Linear(169 -> 512pad), NO activation (matches PyTorch).
    h = jnp.dot(x_ref[...].astype(jnp.bfloat16), w1_ref[...],
                preferred_element_type=jnp.float32) + b1_ref[...]

    # median_layer: (Linear(512pad -> 512pad) + Tanh) x 3.
    # bf16 MXU inputs, f32 accumulation, f32 tanh (EUP).
    h = jnp.tanh(jnp.dot(h.astype(jnp.bfloat16), w2_ref[...],
                         preferred_element_type=jnp.float32) + b2_ref[...])
    h = jnp.tanh(jnp.dot(h.astype(jnp.bfloat16), w3_ref[...],
                         preferred_element_type=jnp.float32) + b3_ref[...])
    h = jnp.tanh(jnp.dot(h.astype(jnp.bfloat16), w4_ref[...],
                         preferred_element_type=jnp.float32) + b4_ref[...])

    # output_layer: Linear(512pad -> 169), no activation.
    o_ref[...] = jnp.dot(h.astype(jnp.bfloat16), w5_ref[...],
                         preferred_element_type=jnp.float32) + b5_ref[...]


@jax.jit
def mlp2_forward(x, kernel_params):
    """x: (B, 13, 13) f32 -> (B, 13, 13) f32."""
    B = x.shape[0]
    assert x.shape[-2:] == PATCH
    x_flat = x.reshape(B, IN_FEATS)

    # Batch tile: multiple of 8 sublanes, capped so a tiny batch stays 1 tile.
    tb = min(TILE_B, ((B + 7) // 8) * 8)
    Bp = ((B + tb - 1) // tb) * tb
    if Bp != B:
        # Pad only the ragged tail; no-op when B is already tile-aligned.
        x_flat = jnp.pad(x_flat, ((0, Bp - B), (0, 0)))

    (w1, b1), (w2, b2), (w3, b3), (w4, b4), (w5, b5) = kernel_params
    weights_and_biases = (w1, b1, w2, b2, w3, b3, w4, b4, w5, b5)

    # Activation tiles march down the batch; weights/biases keep a constant
    # block index, so Pallas keeps them resident in VMEM across the grid.
    act_spec = pl.BlockSpec((tb, IN_FEATS), lambda i: (i, 0))

    def resident(arr):
        return pl.BlockSpec(arr.shape, lambda i: (0, 0))

    out_flat = pl.pallas_call(
        mlp2_kernel,
        out_shape=jax.ShapeDtypeStruct((Bp, IN_FEATS), jnp.float32),
        grid=(Bp // tb,),
        in_specs=[act_spec] + [resident(a) for a in weights_and_biases],
        out_specs=act_spec,
        compiler_params=pltpu.CompilerParams(
            dimension_semantics=("parallel",)),
    )(x_flat, *weights_and_biases)

    return out_flat[:B].reshape(B, *PATCH)


def init_linear(key, in_dim, out_dim):
    """Mimic torch.nn.Linear default init: U(-1/sqrt(fan_in), 1/sqrt(fan_in)).
    Weight stored pre-transposed: (in_dim, out_dim)."""
    kw, kb = jax.random.split(key)
    bound = 1.0 / math.sqrt(in_dim)
    w = jax.random.uniform(kw, (in_dim, out_dim), jnp.float32, -bound, bound)
    b = jax.random.uniform(kb, (out_dim,), jnp.float32, -bound, bound)
    return w, b


def init_params(key):
    keys = jax.random.split(key, 5)
    return (
        init_linear(keys[0], IN_FEATS, HIDDEN),   # input_layer Linear
        init_linear(keys[1], HIDDEN, HIDDEN),     # median Linear 1
        init_linear(keys[2], HIDDEN, HIDDEN),     # median Linear 2
        init_linear(keys[3], HIDDEN, HIDDEN),     # median Linear 3
        init_linear(keys[4], HIDDEN, IN_FEATS),   # output_layer Linear
    )


def pack_params(params):
    """Zero-pad the 511 hidden dim to 512 (lane-dense, exact because padding
    is zeros) and cast weights to bf16. Biases stay f32, shaped (1, out)."""
    def pad_to(a, shape):
        return jnp.pad(a, [(0, t - s) for s, t in zip(a.shape, shape)])

    (w1, b1), (w2, b2), (w3, b3), (w4, b4), (w5, b5) = params
    padded = (
        (pad_to(w1, (IN_FEATS, HIDDEN_PAD)), pad_to(b1, (HIDDEN_PAD,))),
        (pad_to(w2, (HIDDEN_PAD, HIDDEN_PAD)), pad_to(b2, (HIDDEN_PAD,))),
        (pad_to(w3, (HIDDEN_PAD, HIDDEN_PAD)), pad_to(b3, (HIDDEN_PAD,))),
        (pad_to(w4, (HIDDEN_PAD, HIDDEN_PAD)), pad_to(b4, (HIDDEN_PAD,))),
        (pad_to(w5, (HIDDEN_PAD, IN_FEATS)), b5),
    )
    return tuple(
        (w.astype(jnp.bfloat16), b.reshape(1, -1).astype(jnp.float32))
        for w, b in padded
    )


def mlp2_reference(x, params):
    """Pure-JAX f32 reference of the PyTorch forward."""
    B = x.shape[0]
    (w1, b1), (w2, b2), (w3, b3), (w4, b4), (w5, b5) = params
    h = x.reshape(B, IN_FEATS) @ w1 + b1
    h = jnp.tanh(h @ w2 + b2)
    h = jnp.tanh(h @ w3 + b3)
    h = jnp.tanh(h @ w4 + b4)
    y = h @ w5 + b5
    return y.reshape(B, *PATCH)


if __name__ == "__main__":
    key = jax.random.PRNGKey(0)
    kx, kp = jax.random.split(key)

    batch = 2
    x = jax.random.normal(kx, (batch, 13, 13), jnp.float32)

    params = init_params(kp)                # f32, unpadded (reference)
    kernel_params = pack_params(params)     # bf16 weights, 512-padded

    out = jax.block_until_ready(mlp2_forward(x, kernel_params))
    ref = mlp2_reference(x, params)

    assert out.shape == (batch, 13, 13)
    # bf16 weights / MXU inputs vs f32 reference -> modest tolerance.
    err = float(jnp.max(jnp.abs(out - ref)))
    assert jnp.allclose(out, ref, atol=3e-2, rtol=3e-2), f"max abs err {err}"

    print("KERNEL_OK")
</pallas_src>

<mosaic_0001>
module attributes {stable_mosaic.version = 11 : i64} {
  func.func @mlp2_kernel(%arg0: i32, %arg1: memref<8x169xf32, #tpu.memory_space<vmem>>, %arg2: memref<169x512xbf16, #tpu.memory_space<vmem>>, %arg3: memref<1x512xf32, #tpu.memory_space<vmem>>, %arg4: memref<512x512xbf16, #tpu.memory_space<vmem>>, %arg5: memref<1x512xf32, #tpu.memory_space<vmem>>, %arg6: memref<512x512xbf16, #tpu.memory_space<vmem>>, %arg7: memref<1x512xf32, #tpu.memory_space<vmem>>, %arg8: memref<512x512xbf16, #tpu.memory_space<vmem>>, %arg9: memref<1x512xf32, #tpu.memory_space<vmem>>, %arg10: memref<512x169xbf16, #tpu.memory_space<vmem>>, %arg11: memref<1x169xf32, #tpu.memory_space<vmem>>, %arg12: memref<8x169xf32, #tpu.memory_space<vmem>>) attributes {dimension_semantics = [#tpu.dimension_semantics<parallel>], iteration_bounds = array<i64: 1>, scalar_prefetch = 0 : i64, scratch_operands = 0 : i64, tpu.core_type = #tpu.core_type<tc>, window_params = [{transform_indices = @transform_0, window_bounds = array<i64: 8, 169>}, {pipeline_mode = #tpu.pipeline_mode<synchronous>, transform_indices = @transform_1, window_bounds = array<i64: 169, 512>}, {pipeline_mode = #tpu.pipeline_mode<synchronous>, transform_indices = @transform_2, window_bounds = array<i64: 1, 512>}, {pipeline_mode = #tpu.pipeline_mode<synchronous>, transform_indices = @transform_3, window_bounds = array<i64: 512, 512>}, {pipeline_mode = #tpu.pipeline_mode<synchronous>, transform_indices = @transform_4, window_bounds = array<i64: 1, 512>}, {pipeline_mode = #tpu.pipeline_mode<synchronous>, transform_indices = @transform_5, window_bounds = array<i64: 512, 512>}, {pipeline_mode = #tpu.pipeline_mode<synchronous>, transform_indices = @transform_6, window_bounds = array<i64: 1, 512>}, {pipeline_mode = #tpu.pipeline_mode<synchronous>, transform_indices = @transform_7, window_bounds = array<i64: 512, 512>}, {pipeline_mode = #tpu.pipeline_mode<synchronous>, transform_indices = @transform_8, window_bounds = array<i64: 1, 512>}, {pipeline_mode = #tpu.pipeline_mode<synchronous>, transform_indices = @transform_9, window_bounds = array<i64: 512, 169>}, {pipeline_mode = #tpu.pipeline_mode<synchronous>, transform_indices = @transform_10, window_bounds = array<i64: 1, 169>}, {transform_indices = @transform_11, window_bounds = array<i64: 8, 169>}]} {
    %c0 = arith.constant 0 : index
    %c0_0 = arith.constant 0 : index
    %0 = vector.load %arg1[%c0, %c0_0] : memref<8x169xf32, #tpu.memory_space<vmem>>, vector<8x169xf32>
    %1 = arith.truncf %0 : vector<8x169xf32> to vector<8x169xbf16>
    %c0_1 = arith.constant 0 : index
    %c0_2 = arith.constant 0 : index
    %2 = vector.load %arg2[%c0_1, %c0_2] : memref<169x512xbf16, #tpu.memory_space<vmem>>, vector<169x512xbf16>
    %cst = arith.constant dense<0.000000e+00> : vector<8x512xf32>
    %3 = tpu.matmul %1, %2, %cst {dimension_numbers = #tpu.dot_dimension_numbers<[1], [0], [0], [1], [0, 0, 1, 1], [], []>} : vector<8x169xbf16>, vector<169x512xbf16>, vector<8x512xf32> -> vector<8x512xf32>
    %c0_3 = arith.constant 0 : index
    %c0_4 = arith.constant 0 : index
    %4 = vector.load %arg3[%c0_3, %c0_4] : memref<1x512xf32, #tpu.memory_space<vmem>>, vector<1x512xf32>
    %5 = vector.broadcast %4 : vector<1x512xf32> to vector<8x512xf32>
    %6 = arith.addf %3, %5 : vector<8x512xf32>
    %7 = arith.truncf %6 : vector<8x512xf32> to vector<8x512xbf16>
    %c0_5 = arith.constant 0 : index
    %c0_6 = arith.constant 0 : index
    %8 = vector.load %arg4[%c0_5, %c0_6] : memref<512x512xbf16, #tpu.memory_space<vmem>>, vector<512x512xbf16>
    %cst_7 = arith.constant dense<0.000000e+00> : vector<8x512xf32>
    %9 = tpu.matmul %7, %8, %cst_7 {dimension_numbers = #tpu.dot_dimension_numbers<[1], [0], [0], [1], [0, 0, 1, 1], [], []>} : vector<8x512xbf16>, vector<512x512xbf16>, vector<8x512xf32> -> vector<8x512xf32>
    %c0_8 = arith.constant 0 : index
    %c0_9 = arith.constant 0 : index
    %10 = vector.load %arg5[%c0_8, %c0_9] : memref<1x512xf32, #tpu.memory_space<vmem>>, vector<1x512xf32>
    %11 = vector.broadcast %10 : vector<1x512xf32> to vector<8x512xf32>
    %12 = arith.addf %9, %11 : vector<8x512xf32>
    %13 = math.tanh %12 : vector<8x512xf32>
    %14 = arith.truncf %13 : vector<8x512xf32> to vector<8x512xbf16>
    %c0_10 = arith.constant 0 : index
    %c0_11 = arith.constant 0 : index
    %15 = vector.load %arg6[%c0_10, %c0_11] : memref<512x512xbf16, #tpu.memory_space<vmem>>, vector<512x512xbf16>
    %cst_12 = arith.constant dense<0.000000e+00> : vector<8x512xf32>
    %16 = tpu.matmul %14, %15, %cst_12 {dimension_numbers = #tpu.dot_dimension_numbers<[1], [0], [0], [1], [0, 0, 1, 1], [], []>} : vector<8x512xbf16>, vector<512x512xbf16>, vector<8x512xf32> -> vector<8x512xf32>
    %c0_13 = arith.constant 0 : index
    %c0_14 = arith.constant 0 : index
    %17 = vector.load %arg7[%c0_13, %c0_14] : memref<1x512xf32, #tpu.memory_space<vmem>>, vector<1x512xf32>
    %18 = vector.broadcast %17 : vector<1x512xf32> to vector<8x512xf32>
    %19 = arith.addf %16, %18 : vector<8x512xf32>
    %20 = math.tanh %19 : vector<8x512xf32>
    %21 = arith.truncf %20 : vector<8x512xf32> to vector<8x512xbf16>
    %c0_15 = arith.constant 0 : index
    %c0_16 = arith.constant 0 : index
    %22 = vector.load %arg8[%c0_15, %c0_16] : memref<512x512xbf16, #tpu.memory_space<vmem>>, vector<512x512xbf16>
    %cst_17 = arith.constant dense<0.000000e+00> : vector<8x512xf32>
    %23 = tpu.matmul %21, %22, %cst_17 {dimension_numbers = #tpu.dot_dimension_numbers<[1], [0], [0], [1], [0, 0, 1, 1], [], []>} : vector<8x512xbf16>, vector<512x512xbf16>, vector<8x512xf32> -> vector<8x512xf32>
    %c0_18 = arith.constant 0 : index
    %c0_19 = arith.constant 0 : index
    %24 = vector.load %arg9[%c0_18, %c0_19] : memref<1x512xf32, #tpu.memory_space<vmem>>, vector<1x512xf32>
    %25 = vector.broadcast %24 : vector<1x512xf32> to vector<8x512xf32>
    %26 = arith.addf %23, %25 : vector<8x512xf32>
    %27 = math.tanh %26 : vector<8x512xf32>
    %28 = arith.truncf %27 : vector<8x512xf32> to vector<8x512xbf16>
    %c0_20 = arith.constant 0 : index
    %c0_21 = arith.constant 0 : index
    %29 = vector.load %arg10[%c0_20, %c0_21] : memref<512x169xbf16, #tpu.memory_space<vmem>>, vector<512x169xbf16>
    %cst_22 = arith.constant dense<0.000000e+00> : vector<8x169xf32>
    %30 = tpu.matmul %28, %29, %cst_22 {dimension_numbers = #tpu.dot_dimension_numbers<[1], [0], [0], [1], [0, 0, 1, 1], [], []>} : vector<8x512xbf16>, vector<512x169xbf16>, vector<8x169xf32> -> vector<8x169xf32>
    %c0_23 = arith.constant 0 : index
    %c0_24 = arith.constant 0 : index
    %31 = vector.load %arg11[%c0_23, %c0_24] : memref<1x169xf32, #tpu.memory_space<vmem>>, vector<1x169xf32>
    %32 = vector.broadcast %31 : vector<1x169xf32> to vector<8x169xf32>
    %33 = arith.addf %30, %32 : vector<8x169xf32>
    %c0_25 = arith.constant 0 : index
    %c0_26 = arith.constant 0 : index
    %34 = vector.load %arg12[%c0_25, %c0_26] : memref<8x169xf32, #tpu.memory_space<vmem>>, vector<8x169xf32>
    tpu.vector_store %arg12[%c0_25, %c0_26], %33 {strides = array<i32>} : memref<8x169xf32, #tpu.memory_space<vmem>>, vector<8x169xf32>,
    return
  }
  func.func @transform_0(%arg0: i32) -> (i32, i32) {
    %c0_i32 = arith.constant 0 : i32
    %c0_i32_0 = arith.constant 0 : i32
    return %arg0, %c0_i32 : i32, i32
  }
  func.func @transform_1(%arg0: i32) -> (i32, i32) {
    %c0_i32 = arith.constant 0 : i32
    %c0_i32_0 = arith.constant 0 : i32
    %c0_i32_1 = arith.constant 0 : i32
    return %c0_i32, %c0_i32_0 : i32, i32
  }
  func.func @transform_2(%arg0: i32) -> (i32, i32) {
    %c0_i32 = arith.constant 0 : i32
    %c0_i32_0 = arith.constant 0 : i32
    %c0_i32_1 = arith.constant 0 : i32
    return %c0_i32, %c0_i32_0 : i32, i32
  }
  func.func @transform_3(%arg0: i32) -> (i32, i32) {
    %c0_i32 = arith.constant 0 : i32
    %c0_i32_0 = arith.constant 0 : i32
    %c0_i32_1 = arith.constant 0 : i32
    return %c0_i32, %c0_i32_0 : i32, i32
  }
  func.func @transform_4(%arg0: i32) -> (i32, i32) {
    %c0_i32 = arith.constant 0 : i32
    %c0_i32_0 = arith.constant 0 : i32
    %c0_i32_1 = arith.constant 0 : i32
    return %c0_i32, %c0_i32_0 : i32, i32
  }
  func.func @transform_5(%arg0: i32) -> (i32, i32) {
    %c0_i32 = arith.constant 0 : i32
    %c0_i32_0 = arith.constant 0 : i32
    %c0_i32_1 = arith.constant 0 : i32
    return %c0_i32, %c0_i32_0 : i32, i32
  }
  func.func @transform_6(%arg0: i32) -> (i32, i32) {
    %c0_i32 = arith.constant 0 : i32
    %c0_i32_0 = arith.constant 0 : i32
    %c0_i32_1 = arith.constant 0 : i32
    return %c0_i32, %c0_i32_0 : i32, i32
  }
  func.func @transform_7(%arg0: i32) -> (i32, i32) {
    %c0_i32 = arith.constant 0 : i32
    %c0_i32_0 = arith.constant 0 : i32
    %c0_i32_1 = arith.constant 0 : i32
    return %c0_i32, %c0_i32_0 : i32, i32
  }
  func.func @transform_8(%arg0: i32) -> (i32, i32) {
    %c0_i32 = arith.constant 0 : i32
    %c0_i32_0 = arith.constant 0 : i32
    %c0_i32_1 = arith.constant 0 : i32
    return %c0_i32, %c0_i32_0 : i32, i32
  }
  func.func @transform_9(%arg0: i32) -> (i32, i32) {
    %c0_i32 = arith.constant 0 : i32
    %c0_i32_0 = arith.constant 0 : i32
    %c0_i32_1 = arith.constant 0 : i32
    return %c0_i32, %c0_i32_0 : i32, i32
  }
  func.func @transform_10(%arg0: i32) -> (i32, i32) {
    %c0_i32 = arith.constant 0 : i32
    %c0_i32_0 = arith.constant 0 : i32
    %c0_i32_1 = arith.constant 0 : i32
    return %c0_i32, %c0_i32_0 : i32, i32
  }
  func.func @transform_11(%arg0: i32) -> (i32, i32) {
    %c0_i32 = arith.constant 0 : i32
    %c0_i32_0 = arith.constant 0 : i32
    return %arg0, %c0_i32 : i32, i32
  }
}

</mosaic_0001>

<bundles_post_ra>
// kernel: mlp2_forward.1
= control target key start
LH: loop header
LB: loop body
LE: loop exit
PB: predicated region body
PF: predicated region fallthrough
CT: control target
= control target key end

     0   :  { %16 = vsyncpa [#allocation3], 0  ;;  %s5667_s0 = inlined_call_operand.vmem [shape: f32[8,169], index: 0, kind: input, shape index: {}]   ;;  %s5668_s1 = inlined_call_operand.vmem [shape: bf16[169,512], index: 1, kind: input, shape index: {}]   ;;  %s5669_s2 = inlined_call_operand.vmem [shape: f32[1,512], index: 2, kind: input, shape index: {}]   ;;  %s5670_s3 = inlined_call_operand.hbm [shape: bf16[512,512], index: 3, kind: input, shape index: {}]   ;;  %s5671_s4 = inlined_call_operand.vmem [shape: f32[1,512], index: 4, kind: input, shape index: {}]   ;;  %s5672_s5 = inlined_call_operand.hbm [shape: bf16[512,512], index: 5, kind: input, shape index: {}]   ;;  %s5673_s6 = inlined_call_operand.vmem [shape: f32[1,512], index: 6, kind: input, shape index: {}]   ;;  %s5674_s7 = inlined_call_operand.hbm [shape: bf16[512,512], index: 7, kind: input, shape index: {}]   ;;  %s5675_s8 = inlined_call_operand.vmem [shape: f32[1,512], index: 8, kind: input, shape index: {}]   ;;  %s5676_s9 = inlined_call_operand.vmem [shape: bf16[512,169], index: 9, kind: input, shape index: {}]   ;;  %s5677_s10 = inlined_call_operand.vmem [shape: f32[1,169], index: 10, kind: input, shape index: {}]   ;;  %s5678_s11 = inlined_call_operand.vmem [shape: f32[8,169], index: 11, kind: output, shape index: {}]  }
   0x1   :  { %17 = vsyncpa [#allocation5], 0  ;;  %s5170_s17 = smov [#allocation4]   ;;  %s5171_s19 = smov [#allocation2]  }
   0x2   :  { %s43_s18 = sshll.u32 %s5170_s17, 4  ;;  %s29_s20 = sshll.u32 %s5171_s19, 4  ;;  %s44_s18 = int_to_ptr.vmem [resolvable:$true] %s43_s18  ;;  %s30_s20 = int_to_ptr.vmem [resolvable:$true] %s29_s20 }
   0x3   :  { %s5114_s21 = scalar_lea.vmem %s44_s18, 16384  ;;  %p5119_p1 = scmp.lt.s32.totalorder %s44_s18, %s44_s18 }
   0x4   :  { %p5115_p0 = scmp.ne.s32.totalorder %s44_s18, %s5114_s21  ;;  %p5120_p2 = scmp.lt.s32.totalorder %s5114_s21, %s5114_s21 }
   0x6   :  { %p5121_p3 = por %p5120_p2, %p5119_p1 }
   0x8   :  { %p5122_p4 = pnand %p5121_p3, %p5115_p0 }
   0xa   :  { %5125 = shalt.err (!%p5122_p4)
}
   0xb   :  { %s5172_s22 = smov 256   ;;  %s5173_s23 = smov 16  }
   0xc   :  { %49 = dma.hbm_to_vmem [thread:$0]  %s5672_s5, 16384, %s44_s18, [#allocation5], %s5172_s22, %s5172_s22, %s5173_s23  }
   0xd   :  { %s5134_s26 = scalar_lea.vmem %s30_s20, 16384  ;;  %p5139_p6 = scmp.lt.s32.totalorder %s30_s20, %s30_s20 }
   0xe   :  { %p5135_p5 = scmp.ne.s32.totalorder %s30_s20, %s5134_s26  ;;  %p5140_p7 = scmp.lt.s32.totalorder %s5134_s26, %s5134_s26 }
  0x10   :  { %p5141_p8 = por %p5140_p7, %p5139_p6 }
  0x12   :  { %p5142_p9 = pnand %p5141_p8, %p5135_p5 }
  0x14   :  { %5145 = shalt.err (!%p5142_p9)
}
  0x15   :  { %35 = dma.hbm_to_vmem [thread:$0]  %s5670_s3, 16384, %s30_s20, [#allocation3], %s5172_s22, %s5172_s22, %s5173_s23  }
  0x16   :  { %s5174_s29 = smov [#allocation6]  }
  0x17   :  { %s57_s30 = sshll.u32 %s5174_s29, 4  ;;  %s58_s30 = int_to_ptr.vmem [resolvable:$true] %s57_s30 }
  0x18   :  { %s5154_s12 = scalar_lea.vmem %s58_s30, 16384  ;;  %p5159_p11 = scmp.lt.s32.totalorder %s58_s30, %s58_s30 }
  0x19   :  { %p5155_p10 = scmp.ne.s32.totalorder %s58_s30, %s5154_s12  ;;  %p5160_p12 = scmp.lt.s32.totalorder %s5154_s12, %s5154_s12 }
  0x1b   :  { %p5161_p13 = por %p5160_p12, %p5159_p11 }
  0x1d   :  { %p5162_p0 = pnand %p5161_p13, %p5155_p10 }
  0x1f   :  { %5165 = shalt.err (!%p5162_p0)
}
  0x20   :  { %63 = dma.hbm_to_vmem [thread:$0]  %s5674_s7, 16384, %s58_s30, [#allocation5], %s5172_s22, %s5172_s22, %s5173_s23  }
  0x21   :  { %5166 = dma.done.wait [#allocation3], 16384  }
  0x22   :  { %5167 = vsyncadd [#allocation3], 4294950912 }
  0x23   :  { %5168 = dma.done.wait [#allocation5], 32768  }
  0x24   :  { %5169 = vsyncadd [#allocation5], 4294934528  ;;  %v4344_v0 = vld [vmem:[%s5668_s1 + $0xe4] ss:$16 sps:$4 sm:$0xff]   ;;  %v4346_v1 = vld [vmem:[%s5668_s1 + $0xec] ss:$16 sps:$4 sm:$0xff]  }
  0x25   :  { %386 = vmatprep.subr.bf16.mxu0 %v4344_v0  ;;  %v4348_v2 = vld [vmem:[%s5668_s1 + $0xe0] ss:$16 sps:$4 sm:$0xff]   ;;  %v4349_v3 = vld [vmem:[%s5668_s1 + $0xe8] ss:$16 sps:$4 sm:$0xff]   ;;  %427 = vmatprep.subr.bf16.mxu1 %v4346_v1  ;;  %v4350_v4 = vld [vmem:[%s5668_s1 + $0xc4] ss:$16 sps:$4 sm:$0xff]  }
  0x26   :  { %387 = vmatpush1.bf16.msra.mxu0 %v4348_v2  ;;  %428 = vmatpush1.bf16.msra.mxu1 %v4349_v3  ;;  %v4352_v5 = vld [vmem:[%s5668_s1 + $0xcc] ss:$16 sps:$4 sm:$0xff]   ;;  %v4354_v6 = vld [vmem:[%s5668_s1 + $0xc0] ss:$16 sps:$4 sm:$0xff]   ;;  %v4355_v7 = vld [vmem:[%s5668_s1 + $0xc8] ss:$16 sps:$4 sm:$0xff]  }
  0x27   :  { %388 = vmatprep.subr.bf16.mxu0 %v4350_v4  ;;  %429 = vmatprep.subr.bf16.mxu1 %v4352_v5  ;;  %v4356_v8 = vld [vmem:[%s5668_s1 + $0xa4] ss:$16 sps:$4 sm:$0xff]   ;;  %v4358_v9 = vld [vmem:[%s5668_s1 + $0xac] ss:$16 sps:$4 sm:$0xff]   ;;  %v4360_v10 = vld [vmem:[%s5668_s1 + $0xa0] ss:$16 sps:$4 sm:$0xff]  }
  0x28   :  { %v4361_v11 = vld [vmem:[%s5668_s1 + $0xa8] ss:$16 sps:$4 sm:$0xff]   ;;  %v4362_v12 = vld [vmem:[%s5668_s1 + $0x84] ss:$16 sps:$4 sm:$0xff]   ;;  %v4364_v13 = vld [vmem:[%s5668_s1 + $0x8c] ss:$16 sps:$4 sm:$0xff]  }
  0x29   :  { %v4366_v14 = vld [vmem:[%s5668_s1 + $0x80] ss:$16 sps:$4 sm:$0xff]   ;;  %v4367_v15 = vld [vmem:[%s5668_s1 + $0x88] ss:$16 sps:$4 sm:$0xff]   ;;  %v4368_v16 = vld [vmem:[%s5668_s1 + $0x64] ss:$16 sps:$4 sm:$0xff]  }
  0x2a   :  { %389 = vmatpush1.bf16.msra.mxu0 %v4354_v6  ;;  %430 = vmatpush1.bf16.msra.mxu1 %v4355_v7  ;;  %v4370_v17 = vld [vmem:[%s5668_s1 + $0x6c] ss:$16 sps:$4 sm:$0xff]   ;;  %v4372_v18 = vld [vmem:[%s5668_s1 + $0x60] ss:$16 sps:$4 sm:$0xff]   ;;  %v4373_v19 = vld [vmem:[%s5668_s1 + $0x68] ss:$16 sps:$4 sm:$0xff]  }
  0x2b   :  { %390 = vmatprep.subr.bf16.mxu0 %v4356_v8  ;;  %431 = vmatprep.subr.bf16.mxu1 %v4358_v9  ;;  %v4374_v20 = vld [vmem:[%s5668_s1 + $0x44] ss:$16 sps:$4 sm:$0xff]   ;;  %v4376_v21 = vld [vmem:[%s5668_s1 + $0x4c] ss:$16 sps:$4 sm:$0xff]   ;;  %v4378_v22 = vld [vmem:[%s5668_s1 + $0x40] ss:$16 sps:$4 sm:$0xff]  }
  0x2c   :  { %vm370_vm0 = vcmask 1043456   ;;  %v4379_v23 = vld [vmem:[%s5668_s1 + $0x48] ss:$16 sps:$4 sm:$0xff]   ;;  %v4380_v24 = vld [vmem:[%s5668_s1 + $0x24] ss:$16 sps:$4 sm:$0xff]   ;;  %vm371_vm1 = vcmask 1044480  }
  0x2d   :  { %v4382_v25 = vld [vmem:[%s5668_s1 + $0x2c] ss:$16 sps:$4 sm:$0xff]   ;;  %v4384_v26 = vld [vmem:[%s5668_s1 + $0x20] ss:$16 sps:$4 sm:$0xff]   ;;  %v5175_v27 = vmov 65535   ;;  %vm366_vm2 = vcmask 334848  }
  0x2e   :  { %391 = vmatpush1.bf16.msra.mxu0 %v4360_v10  ;;  %432 = vmatpush1.bf16.msra.mxu1 %v4361_v11  ;;  %v372_v28 = vsel %vm370_vm0, 4294967295, %v5175_v27  ;;  %v4385_v29 = vld [vmem:[%s5668_s1 + $0x28] ss:$16 sps:$4 sm:$0xff]   ;;  %v4386_v30 = vld [vmem:[%s5668_s1 + $0x4] ss:$16 sps:$4 sm:$0xff]  }
  0x2f   :  { %392 = vmatprep.subr.bf16.mxu0 %v4362_v12  ;;  %433 = vmatprep.subr.bf16.mxu1 %v4364_v13  ;;  %v4388_v31 = vld [vmem:[%s5668_s1 + $0xc] ss:$16 sps:$4 sm:$0xff]   ;;  %v4392_v32 = vld [vmem:[%s5668_s1 + $0x144] ss:$16 sps:$4 sm:$0x1f]   ;;  %v373_v36 = vsel %vm371_vm1, %v372_v28, 0 }
  0x30   :  { %v4394_v33 = vld [vmem:[%s5668_s1 + $0x14c] ss:$16 sps:$4 sm:$0x1f]   ;;  %v4390_v34 = vld [vmem:[%s5668_s1] ss:$16 sps:$4 sm:$0xff]   ;;  %v378_v39 = vand.u32 %v4392_v32, %v373_v36 }
  0x31   :  { %v4391_v35 = vld [vmem:[%s5668_s1 + $0x8] ss:$16 sps:$4 sm:$0xff]   ;;  %v4396_v37 = vld [vmem:[%s5668_s1 + $0x140] ss:$16 sps:$4 sm:$0x1f]   ;;  %v384_v40 = vand.u32 %v4394_v33, %v373_v36 }
  0x32   :  { %393 = vmatpush1.bf16.msra.mxu0 %v4366_v14  ;;  %434 = vmatpush1.bf16.msra.mxu1 %v4367_v15  ;;  %v4397_v38 = vld [vmem:[%s5668_s1 + $0x148] ss:$16 sps:$4 sm:$0x1f]   ;;  %v375_v43 = vand.u32 %v4396_v37, %v373_v36  ;;  %v4398_v45 = vld [vmem:[%s5668_s1 + $0x124] ss:$16 sps:$4 sm:$0xff]  }
  0x33   :  { %394 = vmatprep.subr.bf16.mxu0 %v4368_v16  ;;  %435 = vmatprep.subr.bf16.mxu1 %v4370_v17  ;;  %v81_v41 = vld [vmem:[%s5667_s0 + $0x8] sm:$0xff]  ;;  %v381_v44 = vand.u32 %v4397_v38, %v373_v36  ;;  %v4402_v47 = vld [vmem:[%s5668_s1 + $0x120] ss:$16 sps:$4 sm:$0xff]   ;;  %v4404_v49 = vld [vmem:[%s5668_s1 + $0x104] ss:$16 sps:$4 sm:$0xff]  }
  0x34   :  { %v83_v42 = vpack.c.bf16 %v81_v41, %v81_v41  ;;  %v4400_v46 = vld [vmem:[%s5668_s1 + $0x12c] ss:$16 sps:$4 sm:$0xff]   ;;  %v4403_v48 = vld [vmem:[%s5668_s1 + $0x128] ss:$16 sps:$4 sm:$0xff]   ;;  %v4408_v51 = vld [vmem:[%s5668_s1 + $0x100] ss:$16 sps:$4 sm:$0xff]  }
  0x35   :  { %v4406_v50 = vld [vmem:[%s5668_s1 + $0x10c] ss:$16 sps:$4 sm:$0xff]   ;;  %v4409_v52 = vld [vmem:[%s5668_s1 + $0x108] ss:$16 sps:$4 sm:$0xff]   ;;  %v80_v53 = vld [vmem:[%s5667_s0] sm:$0xff] }
  0x36   :  { %395 = vmatpush1.bf16.msra.mxu0 %v4372_v18  ;;  %436 = vmatpush1.bf16.msra.mxu1 %v4373_v19  ;;  %v4412_v54 = vld [vmem:[#allocation2 + $0xe4] ss:$16 sps:$4 sm:$0xff]   ;;  %v82_v56 = vpack.c.bf16 %v80_v53, %v80_v53  ;;  %v4410_v57 = vld [vmem:[#allocation2 + $0xe0] ss:$16 sps:$4 sm:$0xff]  }
  0x37   :  { %396 = vmatprep.subr.bf16.mxu0 %v4374_v20  ;;  %437 = vmatprep.subr.bf16.mxu1 %v4376_v21  ;;  %v4415_v55 = vld [vmem:[#allocation2 + $0x2e4] ss:$16 sps:$4 sm:$0xff]   ;;  %v4413_v58 = vld [vmem:[#allocation2 + $0x2e0] ss:$16 sps:$4 sm:$0xff]  }
  0x38   :  { %3888 = vmatprep.mubr.msk.bf16.mxu0 %vm366_vm2, %v83_v42  ;;  %3889 = vmatprep.mubr.msk.bf16.mxu1 %vm366_vm2, %v83_v42  ;;  %v4418_v59 = vld [vmem:[#allocation2 + $0xc4] ss:$16 sps:$4 sm:$0xff]   ;;  %v4416_v61 = vld [vmem:[#allocation2 + $0xc0] ss:$16 sps:$4 sm:$0xff]  }
  0x39   :  { %v4421_v60 = vld [vmem:[#allocation2 + $0x2c4] ss:$16 sps:$4 sm:$0xff]   ;;  %v4419_v62 = vld [vmem:[#allocation2 + $0x2c0] ss:$16 sps:$4 sm:$0xff]  }
  0x3a   :  { %397 = vmatpush1.bf16.msra.mxu0 %v4378_v22  ;;  %438 = vmatpush1.bf16.msra.mxu1 %v4379_v23  ;;  %v4424_v63 = vld [vmem:[#allocation2 + $0xa4] ss:$16 sps:$4 sm:$0xff]   ;;  %v4422_v1 = vld [vmem:[#allocation2 + $0xa0] ss:$16 sps:$4 sm:$0xff]  }
  0x3b   :  { %398 = vmatprep.subr.bf16.mxu0 %v4380_v24  ;;  %439 = vmatprep.subr.bf16.mxu1 %v4382_v25  ;;  %v4427_v0 = vld [vmem:[#allocation2 + $0x2a4] ss:$16 sps:$4 sm:$0xff]   ;;  %v4425_v2 = vld [vmem:[#allocation2 + $0x2a0] ss:$16 sps:$4 sm:$0xff]  }
  0x3c   :  { %v4430_v3 = vld [vmem:[#allocation2 + $0x84] ss:$16 sps:$4 sm:$0xff]   ;;  %v4428_v5 = vld [vmem:[#allocation2 + $0x80] ss:$16 sps:$4 sm:$0xff]  }
  0x3d   :  { %v4433_v4 = vld [vmem:[#allocation2 + $0x284] ss:$16 sps:$4 sm:$0xff]   ;;  %v4431_v6 = vld [vmem:[#allocation2 + $0x280] ss:$16 sps:$4 sm:$0xff]  }
  0x3e   :  { %399 = vmatpush1.bf16.msra.mxu0 %v4384_v26  ;;  %440 = vmatpush1.bf16.msra.mxu1 %v4385_v29  ;;  %v4436_v7 = vld [vmem:[#allocation2 + $0x64] ss:$16 sps:$4 sm:$0xff]   ;;  %v4434_v9 = vld [vmem:[#allocation2 + $0x60] ss:$16 sps:$4 sm:$0xff]  }
  0x3f   :  { %400 = vmatprep.subr.bf16.mxu0 %v4386_v30  ;;  %441 = vmatprep.subr.bf16.mxu1 %v4388_v31  ;;  %v4439_v8 = vld [vmem:[#allocation2 + $0x264] ss:$16 sps:$4 sm:$0xff]   ;;  %v4437_v10 = vld [vmem:[#allocation2 + $0x260] ss:$16 sps:$4 sm:$0xff]  }
  0x40   :  { %v4442_v11 = vld [vmem:[#allocation2 + $0x44] ss:$16 sps:$4 sm:$0xff]   ;;  %v4440_v13 = vld [vmem:[#allocation2 + $0x40] ss:$16 sps:$4 sm:$0xff]  }
  0x41   :  { %v4445_v12 = vld [vmem:[#allocation2 + $0x244] ss:$16 sps:$4 sm:$0xff]   ;;  %v4443_v14 = vld [vmem:[#allocation2 + $0x240] ss:$16 sps:$4 sm:$0xff]  }
  0x42   :  { %401 = vmatpush1.bf16.msra.mxu0 %v4390_v34  ;;  %442 = vmatpush1.bf16.msra.mxu1 %v4391_v35  ;;  %v4448_v15 = vld [vmem:[#allocation2 + $0x24] ss:$16 sps:$4 sm:$0xff]   ;;  %v4446_v17 = vld [vmem:[#allocation2 + $0x20] ss:$16 sps:$4 sm:$0xff]  }
  0x43   :  { %412 = vmatprep.subr.bf16.mxu0 %v378_v39  ;;  %453 = vmatprep.subr.bf16.mxu1 %v384_v40  ;;  %v4451_v16 = vld [vmem:[#allocation2 + $0x224] ss:$16 sps:$4 sm:$0xff]   ;;  %v4449_v18 = vld [vmem:[#allocation2 + $0x220] ss:$16 sps:$4 sm:$0xff]  }
  0x44   :  { %v4454_v19 = vld [vmem:[#allocation2 + $0x4] ss:$16 sps:$4 sm:$0xff]   ;;  %v4452_v21 = vld [vmem:[#allocation2] ss:$16 sps:$4 sm:$0xff]  }
  0x45   :  { %v4457_v20 = vld [vmem:[#allocation2 + $0x204] ss:$16 sps:$4 sm:$0xff]   ;;  %v4455_v22 = vld [vmem:[#allocation2 + $0x200] ss:$16 sps:$4 sm:$0xff]  }
  0x46   :  { %413 = vmatpush2.bf16.msra.mxu0 %v375_v43  ;;  %454 = vmatpush2.bf16.msra.mxu1 %v381_v44  ;;  %v4460_v23 = vld [vmem:[#allocation2 + $0x1e4] ss:$16 sps:$4 sm:$0xff]   ;;  %v4458_v25 = vld [vmem:[#allocation2 + $0x1e0] ss:$16 sps:$4 sm:$0xff]  }
  0x47   :  { %414 = vmatprep.subr.bf16.mxu0 %v4398_v45  ;;  %455 = vmatprep.subr.bf16.mxu1 %v4400_v46  ;;  %v4463_v24 = vld [vmem:[#allocation2 + $0x3e4] ss:$16 sps:$4 sm:$0xff]   ;;  %v4461_v26 = vld [vmem:[#allocation2 + $0x3e0] ss:$16 sps:$4 sm:$0xff]  }
  0x48   :  { %v4466_v27 = vld [vmem:[#allocation2 + $0x1c4] ss:$16 sps:$4 sm:$0xff]   ;;  %v4464_v29 = vld [vmem:[#allocation2 + $0x1c0] ss:$16 sps:$4 sm:$0xff]  }
  0x49   :  { %v4469_v28 = vld [vmem:[#allocation2 + $0x3c4] ss:$16 sps:$4 sm:$0xff]   ;;  %v4467_v30 = vld [vmem:[#allocation2 + $0x3c0] ss:$16 sps:$4 sm:$0xff]  }
  0x4a   :  { %415 = vmatpush2.bf16.msra.mxu0 %v4402_v47  ;;  %456 = vmatpush2.bf16.msra.mxu1 %v4403_v48  ;;  %v4472_v31 = vld [vmem:[#allocation2 + $0x1a4] ss:$16 sps:$4 sm:$0xff]   ;;  %v4470_v33 = vld [vmem:[#allocation2 + $0x1a0] ss:$16 sps:$4 sm:$0xff]  }
  0x4b   :  { %416 = vmatprep.subr.bf16.mxu0 %v4404_v49  ;;  %457 = vmatprep.subr.bf16.mxu1 %v4406_v50  ;;  %v4475_v32 = vld [vmem:[#allocation2 + $0x3a4] ss:$16 sps:$4 sm:$0xff]   ;;  %v4473_v34 = vld [vmem:[#allocation2 + $0x3a0] ss:$16 sps:$4 sm:$0xff]  }
  0x4c   :  { %v4478_v35 = vld [vmem:[#allocation2 + $0x184] ss:$16 sps:$4 sm:$0xff]   ;;  %v4476_v37 = vld [vmem:[#allocation2 + $0x180] ss:$16 sps:$4 sm:$0xff]  }
  0x4d   :  { %v4481_v36 = vld [vmem:[#allocation2 + $0x384] ss:$16 sps:$4 sm:$0xff]   ;;  %v4479_v38 = vld [vmem:[#allocation2 + $0x380] ss:$16 sps:$4 sm:$0xff]  }
  0x4e   :  { %417 = vmatpush2.bf16.msra.mxu0 %v4408_v51  ;;  %458 = vmatpush2.bf16.msra.mxu1 %v4409_v52  ;;  %v4484_v39 = vld [vmem:[#allocation2 + $0x164] ss:$16 sps:$4 sm:$0xff]   ;;  %v4482_v41 = vld [vmem:[#allocation2 + $0x160] ss:$16 sps:$4 sm:$0xff]  }
  0x4f   :  { %1262 = vmatprep.subr.bf16.mxu0 %v4412_v54  ;;  %1303 = vmatprep.subr.bf16.mxu1 %v4415_v55  ;;  %v4487_v40 = vld [vmem:[#allocation2 + $0x364] ss:$16 sps:$4 sm:$0xff]   ;;  %v4485_v42 = vld [vmem:[#allocation2 + $0x360] ss:$16 sps:$4 sm:$0xff]   ;;  %v4508_v55 = vld [vmem:[#allocation2 + $0xec] ss:$16 sps:$4 sm:$0xff]  }
  0x50   :  { %v4490_v43 = vld [vmem:[#allocation2 + $0x144] ss:$16 sps:$4 sm:$0xff]   ;;  %v4488_v45 = vld [vmem:[#allocation2 + $0x140] ss:$16 sps:$4 sm:$0xff]  }
  0x51   :  { %419 = vmatmul.mubr.bf16.vlgmr.msra.gmra.mxu0 %v82_v56  ;;  %460 = vmatmul.mubr.bf16.vlgmr.msra.gmra.mxu1 %v82_v56  ;;  %v4493_v44 = vld [vmem:[#allocation2 + $0x344] ss:$16 sps:$4 sm:$0xff]   ;;  %v4491_v46 = vld [vmem:[#allocation2 + $0x340] ss:$16 sps:$4 sm:$0xff]   ;;  %v4511_v56 = vld [vmem:[#allocation2 + $0x2ec] ss:$16 sps:$4 sm:$0xff]  }
  0x52   :  { %1263 = vmatpush1.bf16.msra.mxu0 %v4410_v57  ;;  %1304 = vmatpush1.bf16.msra.mxu1 %v4413_v58  ;;  %v4496_v47 = vld [vmem:[#allocation2 + $0x124] ss:$16 sps:$4 sm:$0xff]   ;;  %v4494_v49 = vld [vmem:[#allocation2 + $0x120] ss:$16 sps:$4 sm:$0xff]   ;;  %v130_v57 = vlaneseq }
  0x53   :  { %1264 = vmatprep.subr.bf16.mxu0 %v4418_v59  ;;  %1305 = vmatprep.subr.bf16.mxu1 %v4421_v60  ;;  %v4499_v48 = vld [vmem:[#allocation2 + $0x324] ss:$16 sps:$4 sm:$0xff]   ;;  %v4497_v50 = vld [vmem:[#allocation2 + $0x320] ss:$16 sps:$4 sm:$0xff]  }
  0x54   :  { %v4502_v51 = vld [vmem:[#allocation2 + $0x104] ss:$16 sps:$4 sm:$0xff]   ;;  %v4500_v53 = vld [vmem:[#allocation2 + $0x100] ss:$16 sps:$4 sm:$0xff]   ;;  %v131_v58 = vshrl.u32 %v130_v57, 7 }
  0x55   :  { %v4505_v52 = vld [vmem:[#allocation2 + $0x304] ss:$16 sps:$4 sm:$0xff]   ;;  %v4503_v54 = vld [vmem:[#allocation2 + $0x300] ss:$16 sps:$4 sm:$0xff]   ;;  %v4563_v57 = vld [vmem:[#allocation2 + $0x3c8] ss:$16 sps:$4 sm:$0xff]  }
  0x56   :  { %1265 = vmatpush1.bf16.msra.mxu0 %v4416_v61  ;;  %1306 = vmatpush1.bf16.msra.mxu1 %v4419_v62  ;;  %v5385_v59 = vsub.s32 2, %v131_v58  ;;  %v5387_v60 = vsub.s32 0, %v131_v58  ;;  %v128_v61 = vld [vmem:[%s5669_s2] sm:$0xf]  ;;  %v5392_v62 = vsub.s32 1, %v131_v58 }
  0x57   :  { %1266 = vmatprep.subr.bf16.mxu0 %v4424_v63  ;;  %1307 = vmatprep.subr.bf16.mxu1 %v4427_v0  ;;  %v5394_v63 = vsub.s32 3, %v131_v58  ;;  %v4568_v58 = vld [vmem:[#allocation2 + $0x1ac] ss:$16 sps:$4 sm:$0xff]  }
  0x58   :  { %v141_v0 = vrot.slane %v128_v61, %v5385_v59 }
  0x5a   :  { %1267 = vmatpush1.bf16.msra.mxu0 %v4422_v1  ;;  %1308 = vmatpush1.bf16.msra.mxu1 %v4425_v2  ;;  %v133_v1 = vrot.slane %v128_v61, %v5387_v60  ;;  %v137_v2 = vrot.slane %v128_v61, %v5392_v62 }
  0x5b   :  { %1268 = vmatprep.subr.bf16.mxu0 %v4430_v3  ;;  %1309 = vmatprep.subr.bf16.mxu1 %v4433_v4  ;;  %v145_v3 = vrot.slane %v128_v61, %v5394_v63  ;;  %v4571_v61 = vld [vmem:[#allocation2 + $0x3ac] ss:$16 sps:$4 sm:$0xff]  }
  0x5e   :  { %1269 = vmatpush1.bf16.msra.mxu0 %v4428_v5  ;;  %1310 = vmatpush1.bf16.msra.mxu1 %v4431_v6 }
  0x5f   :  { %1270 = vmatprep.subr.bf16.mxu0 %v4436_v7  ;;  %1311 = vmatprep.subr.bf16.mxu1 %v4439_v8 }
  0x62   :  { %1271 = vmatpush1.bf16.msra.mxu0 %v4434_v9  ;;  %1312 = vmatpush1.bf16.msra.mxu1 %v4437_v10 }
  0x63   :  { %1272 = vmatprep.subr.bf16.mxu0 %v4442_v11  ;;  %1313 = vmatprep.subr.bf16.mxu1 %v4445_v12 }
  0x66   :  { %1273 = vmatpush1.bf16.msra.mxu0 %v4440_v13  ;;  %1314 = vmatpush1.bf16.msra.mxu1 %v4443_v14 }
  0x67   :  { %1274 = vmatprep.subr.bf16.mxu0 %v4448_v15  ;;  %1315 = vmatprep.subr.bf16.mxu1 %v4451_v16 }
  0x6a   :  { %1275 = vmatpush1.bf16.msra.mxu0 %v4446_v17  ;;  %1316 = vmatpush1.bf16.msra.mxu1 %v4449_v18  ;;  %v4506_v17 = vld [vmem:[#allocation2 + $0xe8] ss:$16 sps:$4 sm:$0xff]  }
  0x6b   :  { %1276 = vmatprep.subr.bf16.mxu0 %v4454_v19  ;;  %1317 = vmatprep.subr.bf16.mxu1 %v4457_v20  ;;  %v4509_v18 = vld [vmem:[#allocation2 + $0x2e8] ss:$16 sps:$4 sm:$0xff]  }
  0x6e   :  { %1277 = vmatpush1.bf16.msra.mxu0 %v4452_v21  ;;  %1318 = vmatpush1.bf16.msra.mxu1 %v4455_v22  ;;  %v4514_v22 = vld [vmem:[#allocation2 + $0xcc] ss:$16 sps:$4 sm:$0xff]  }
  0x6f   :  { %1278 = vmatprep.subr.bf16.mxu0 %v4460_v23  ;;  %1319 = vmatprep.subr.bf16.mxu1 %v4463_v24  ;;  %v4517_v23 = vld [vmem:[#allocation2 + $0x2cc] ss:$16 sps:$4 sm:$0xff]   ;;  %v4512_v24 = vld [vmem:[#allocation2 + $0xc8] ss:$16 sps:$4 sm:$0xff]  }
  0x72   :  { %1279 = vmatpush2.bf16.msra.mxu0 %v4458_v25  ;;  %1320 = vmatpush2.bf16.msra.mxu1 %v4461_v26  ;;  %v4515_v25 = vld [vmem:[#allocation2 + $0x2c8] ss:$16 sps:$4 sm:$0xff]   ;;  %v4520_v26 = vld [vmem:[#allocation2 + $0xac] ss:$16 sps:$4 sm:$0xff]  }
  0x73   :  { %1280 = vmatprep.subr.bf16.mxu0 %v4466_v27  ;;  %1321 = vmatprep.subr.bf16.mxu1 %v4469_v28  ;;  %v4523_v27 = vld [vmem:[#allocation2 + $0x2ac] ss:$16 sps:$4 sm:$0xff]   ;;  %v4518_v28 = vld [vmem:[#allocation2 + $0xa8] ss:$16 sps:$4 sm:$0xff]  }
  0x76   :  { %1281 = vmatpush2.bf16.msra.mxu0 %v4464_v29  ;;  %1322 = vmatpush2.bf16.msra.mxu1 %v4467_v30  ;;  %v4521_v29 = vld [vmem:[#allocation2 + $0x2a8] ss:$16 sps:$4 sm:$0xff]   ;;  %v4526_v30 = vld [vmem:[#allocation2 + $0x8c] ss:$16 sps:$4 sm:$0xff]  }
  0x77   :  { %1282 = vmatprep.subr.bf16.mxu0 %v4472_v31  ;;  %1323 = vmatprep.subr.bf16.mxu1 %v4475_v32  ;;  %v4529_v31 = vld [vmem:[#allocation2 + $0x28c] ss:$16 sps:$4 sm:$0xff]   ;;  %v4524_v32 = vld [vmem:[#allocation2 + $0x88] ss:$16 sps:$4 sm:$0xff]  }
  0x7a   :  { %1283 = vmatpush2.bf16.msra.mxu0 %v4470_v33  ;;  %1324 = vmatpush2.bf16.msra.mxu1 %v4473_v34  ;;  %v4527_v33 = vld [vmem:[#allocation2 + $0x288] ss:$16 sps:$4 sm:$0xff]   ;;  %v4532_v34 = vld [vmem:[#allocation2 + $0x6c] ss:$16 sps:$4 sm:$0xff]  }
  0x7b   :  { %1284 = vmatprep.subr.bf16.mxu0 %v4478_v35  ;;  %1325 = vmatprep.subr.bf16.mxu1 %v4481_v36  ;;  %v4535_v35 = vld [vmem:[#allocation2 + $0x26c] ss:$16 sps:$4 sm:$0xff]   ;;  %v4530_v36 = vld [vmem:[#allocation2 + $0x68] ss:$16 sps:$4 sm:$0xff]  }
  0x7e   :  { %1285 = vmatpush2.bf16.msra.mxu0 %v4476_v37  ;;  %1326 = vmatpush2.bf16.msra.mxu1 %v4479_v38  ;;  %v4533_v37 = vld [vmem:[#allocation2 + $0x268] ss:$16 sps:$4 sm:$0xff]   ;;  %v4538_v38 = vld [vmem:[#allocation2 + $0x4c] ss:$16 sps:$4 sm:$0xff]  }
  0x7f   :  { %1286 = vmatprep.subr.bf16.mxu0 %v4484_v39  ;;  %1327 = vmatprep.subr.bf16.mxu1 %v4487_v40  ;;  %v4541_v39 = vld [vmem:[#allocation2 + $0x24c] ss:$16 sps:$4 sm:$0xff]   ;;  %v4536_v40 = vld [vmem:[#allocation2 + $0x48] ss:$16 sps:$4 sm:$0xff]  }
  0x82   :  { %1287 = vmatpush2.bf16.msra.mxu0 %v4482_v41  ;;  %1328 = vmatpush2.bf16.msra.mxu1 %v4485_v42  ;;  %v4539_v41 = vld [vmem:[#allocation2 + $0x248] ss:$16 sps:$4 sm:$0xff]   ;;  %v4544_v42 = vld [vmem:[#allocation2 + $0x2c] ss:$16 sps:$4 sm:$0xff]  }
  0x83   :  { %1288 = vmatprep.subr.bf16.mxu0 %v4490_v43  ;;  %1329 = vmatprep.subr.bf16.mxu1 %v4493_v44  ;;  %v4547_v43 = vld [vmem:[#allocation2 + $0x22c] ss:$16 sps:$4 sm:$0xff]   ;;  %v4542_v44 = vld [vmem:[#allocation2 + $0x28] ss:$16 sps:$4 sm:$0xff]  }
  0x86   :  { %1289 = vmatpush2.bf16.msra.mxu0 %v4488_v45  ;;  %1330 = vmatpush2.bf16.msra.mxu1 %v4491_v46  ;;  %v4545_v45 = vld [vmem:[#allocation2 + $0x228] ss:$16 sps:$4 sm:$0xff]   ;;  %v4550_v46 = vld [vmem:[#allocation2 + $0xc] ss:$16 sps:$4 sm:$0xff]  }
  0x87   :  { %1290 = vmatprep.subr.bf16.mxu0 %v4496_v47  ;;  %1331 = vmatprep.subr.bf16.mxu1 %v4499_v48  ;;  %v4553_v47 = vld [vmem:[#allocation2 + $0x20c] ss:$16 sps:$4 sm:$0xff]   ;;  %v4548_v48 = vld [vmem:[#allocation2 + $0x8] ss:$16 sps:$4 sm:$0xff]  }
  0x8a   :  { %1291 = vmatpush2.bf16.msra.mxu0 %v4494_v49  ;;  %1332 = vmatpush2.bf16.msra.mxu1 %v4497_v50  ;;  %v4551_v49 = vld [vmem:[#allocation2 + $0x208] ss:$16 sps:$4 sm:$0xff]   ;;  %v4556_v50 = vld [vmem:[#allocation2 + $0x1ec] ss:$16 sps:$4 sm:$0xff]  }
  0x8b   :  { %1292 = vmatprep.subr.bf16.mxu0 %v4502_v51  ;;  %1333 = vmatprep.subr.bf16.mxu1 %v4505_v52  ;;  %v4559_v51 = vld [vmem:[#allocation2 + $0x3ec] ss:$16 sps:$4 sm:$0xff]   ;;  %v4554_v52 = vld [vmem:[#allocation2 + $0x1e8] ss:$16 sps:$4 sm:$0xff]  }
  0x8e   :  { %1293 = vmatpush2.bf16.msra.mxu0 %v4500_v53  ;;  %1334 = vmatpush2.bf16.msra.mxu1 %v4503_v54  ;;  %v4557_v53 = vld [vmem:[#allocation2 + $0x3e8] ss:$16 sps:$4 sm:$0xff]   ;;  %v4562_v54 = vld [vmem:[#allocation2 + $0x1cc] ss:$16 sps:$4 sm:$0xff]  }
  0x8f   :  { %1344 = vmatprep.subr.bf16.mxu0 %v4508_v55  ;;  %1385 = vmatprep.subr.bf16.mxu1 %v4511_v56  ;;  %v4565_v55 = vld [vmem:[#allocation2 + $0x3cc] ss:$16 sps:$4 sm:$0xff]   ;;  %v4560_v56 = vld [vmem:[#allocation2 + $0x1c8] ss:$16 sps:$4 sm:$0xff]  }
 0x111   :  { %v420_v4 = vpop.f32.mrf.mxu0  ;;  %v461_v5 = vpop.f32.mrf.mxu1 }
 0x112   :  { %v462_v6 = vadd.f32 %v461_v5, %v141_v0  ;;  %v421_v7 = vadd.f32 %v420_v4, %v133_v1  ;;  %v4566_v0 = vld [vmem:[#allocation2 + $0x1a8] ss:$16 sps:$4 sm:$0xff]  }
 0x113   :  { %v422_v8 = vpop.f32.mrf.mxu0  ;;  %v463_v9 = vpop.f32.mrf.mxu1  ;;  %v4569_v1 = vld [vmem:[#allocation2 + $0x3a8] ss:$16 sps:$4 sm:$0xff]  }
 0x114   :  { %v423_v10 = vadd.f32 %v422_v8, %v137_v2  ;;  %v464_v11 = vadd.f32 %v463_v9, %v145_v3  ;;  %v5400_v12 = vpack.c.bf16 %v462_v6, %v462_v6  ;;  %v5402_v19 = vpack.c.bf16 %v421_v7, %v421_v7  ;;  %v4574_v2 = vld [vmem:[#allocation2 + $0x18c] ss:$16 sps:$4 sm:$0xff]   ;;  %v4572_v4 = vld [vmem:[#allocation2 + $0x188] ss:$16 sps:$4 sm:$0xff]  }
 0x115   :  { %v424_v13 = vpop.f32.mrf.mxu0  ;;  %v465_v14 = vpop.f32.mrf.mxu1  ;;  %v4577_v3 = vld [vmem:[#allocation2 + $0x38c] ss:$16 sps:$4 sm:$0xff]   ;;  %v4575_v5 = vld [vmem:[#allocation2 + $0x388] ss:$16 sps:$4 sm:$0xff]  }
 0x116   :  { %v469_v15 = vpack.c.bf16 %v423_v10, %v423_v10  ;;  %v471_v16 = vpack.c.bf16 %v464_v11, %v464_v11  ;;  %v4580_v6 = vld [vmem:[#allocation2 + $0x16c] ss:$16 sps:$4 sm:$0xff]   ;;  %v4578_v8 = vld [vmem:[#allocation2 + $0x168] ss:$16 sps:$4 sm:$0xff]  }
 0x117   :  { %v425_v20 = vpop.f32.mrf.mxu0  ;;  %v466_v21 = vpop.f32.mrf.mxu1  ;;  %v4583_v7 = vld [vmem:[#allocation2 + $0x36c] ss:$16 sps:$4 sm:$0xff]   ;;  %v4581_v9 = vld [vmem:[#allocation2 + $0x368] ss:$16 sps:$4 sm:$0xff]  }
 0x118   :  { %1294 = vmatprep.mubr.bf16.mxu0 %v469_v15  ;;  %1335 = vmatprep.mubr.bf16.mxu1 %v471_v16  ;;  %v4586_v10 = vld [vmem:[#allocation2 + $0x14c] ss:$16 sps:$4 sm:$0xff]   ;;  %v4584_v13 = vld [vmem:[#allocation2 + $0x148] ss:$16 sps:$4 sm:$0xff]  }
 0x119   :  { %1295 = vmatmul.mubr.bf16.vlgmr.msra.gmra.mxu0 %v5402_v19  ;;  %1336 = vmatmul.mubr.bf16.vlgmr.msra.gmra.mxu1 %v5400_v12  ;;  %v4589_v11 = vld [vmem:[#allocation2 + $0x34c] ss:$16 sps:$4 sm:$0xff]   ;;  %v4587_v14 = vld [vmem:[#allocation2 + $0x348] ss:$16 sps:$4 sm:$0xff]  }
 0x11a   :  { %1345 = vmatpush1.bf16.msra.mxu0 %v4506_v17  ;;  %1386 = vmatpush1.bf16.msra.mxu1 %v4509_v18  ;;  %v4590_v17 = vld [vmem:[#allocation2 + $0x128] ss:$16 sps:$4 sm:$0xff]   ;;  %v4598_v20 = vld [vmem:[#allocation2 + $0x10c] ss:$16 sps:$4 sm:$0xff]  }
 0x11b   :  { %1376 = vmatprep.mubr.bf16.mxu0 %v469_v15  ;;  %1417 = vmatprep.mubr.bf16.mxu1 %v471_v16  ;;  %v4592_v15 = vld [vmem:[#allocation2 + $0x12c] ss:$16 sps:$4 sm:$0xff]   ;;  %v4593_v18 = vld [vmem:[#allocation2 + $0x328] ss:$16 sps:$4 sm:$0xff]  }
 0x11c   :  { %1346 = vmatprep.subr.bf16.mxu0 %v4514_v22  ;;  %1387 = vmatprep.subr.bf16.mxu1 %v4517_v23  ;;  %v4595_v16 = vld [vmem:[#allocation2 + $0x32c] ss:$16 sps:$4 sm:$0xff]   ;;  %v4596_v22 = vld [vmem:[#allocation2 + $0x108] ss:$16 sps:$4 sm:$0xff]  }
 0x11d   :  { %v4601_v21 = vld [vmem:[#allocation2 + $0x30c] ss:$16 sps:$4 sm:$0xff]   ;;  %v4599_v23 = vld [vmem:[#allocation2 + $0x308] ss:$16 sps:$4 sm:$0xff]  }
 0x11e   :  { %1347 = vmatpush1.bf16.msra.mxu0 %v4512_v24  ;;  %1388 = vmatpush1.bf16.msra.mxu1 %v4515_v25  ;;  %v4604_v24 = vld [vmem:[#allocation4 + $0xe4] ss:$16 sps:$4 sm:$0xff]   ;;  %v4602_v25 = vld [vmem:[#allocation4 + $0xe0] ss:$16 sps:$4 sm:$0xff]  }
 0x11f   :  { %1348 = vmatprep.subr.bf16.mxu0 %v4520_v26  ;;  %1389 = vmatprep.subr.bf16.mxu1 %v4523_v27  ;;  %v4607_v26 = vld [vmem:[#allocation4 + $0xc4] ss:$16 sps:$4 sm:$0xff]   ;;  %v4605_v27 = vld [vmem:[#allocation4 + $0xc0] ss:$16 sps:$4 sm:$0xff]  }
 0x122   :  { %1349 = vmatpush1.bf16.msra.mxu0 %v4518_v28  ;;  %1390 = vmatpush1.bf16.msra.mxu1 %v4521_v29  ;;  %v4610_v28 = vld [vmem:[#allocation4 + $0xa4] ss:$16 sps:$4 sm:$0xff]   ;;  %v4608_v29 = vld [vmem:[#allocation4 + $0xa0] ss:$16 sps:$4 sm:$0xff]  }
 0x123   :  { %1350 = vmatprep.subr.bf16.mxu0 %v4526_v30  ;;  %1391 = vmatprep.subr.bf16.mxu1 %v4529_v31  ;;  %v4613_v30 = vld [vmem:[#allocation4 + $0x84] ss:$16 sps:$4 sm:$0xff]   ;;  %v4611_v31 = vld [vmem:[#allocation4 + $0x80] ss:$16 sps:$4 sm:$0xff]  }
 0x126   :  { %1351 = vmatpush1.bf16.msra.mxu0 %v4524_v32  ;;  %1392 = vmatpush1.bf16.msra.mxu1 %v4527_v33  ;;  %v4616_v32 = vld [vmem:[#allocation4 + $0x64] ss:$16 sps:$4 sm:$0xff]   ;;  %v4614_v33 = vld [vmem:[#allocation4 + $0x60] ss:$16 sps:$4 sm:$0xff]  }
 0x127   :  { %1352 = vmatprep.subr.bf16.mxu0 %v4532_v34  ;;  %1393 = vmatprep.subr.bf16.mxu1 %v4535_v35  ;;  %v4619_v34 = vld [vmem:[#allocation4 + $0x44] ss:$16 sps:$4 sm:$0xff]   ;;  %v4650_v35 = vld [vmem:[#allocation4 + $0x2e0] ss:$16 sps:$4 sm:$0xff]  }
 0x12a   :  { %1353 = vmatpush1.bf16.msra.mxu0 %v4530_v36  ;;  %1394 = vmatpush1.bf16.msra.mxu1 %v4533_v37  ;;  %v4652_v36 = vld [vmem:[#allocation4 + $0x2e4] ss:$16 sps:$4 sm:$0xff]   ;;  %v4620_v37 = vld [vmem:[#allocation4 + $0x20] ss:$16 sps:$4 sm:$0xff]  }
 0x12b   :  { %1354 = vmatprep.subr.bf16.mxu0 %v4538_v38  ;;  %1395 = vmatprep.subr.bf16.mxu1 %v4541_v39  ;;  %v4625_v38 = vld [vmem:[#allocation4 + $0x4] ss:$16 sps:$4 sm:$0xff]   ;;  %v4623_v39 = vld [vmem:[#allocation4] ss:$16 sps:$4 sm:$0xff]  }
 0x12e   :  { %1355 = vmatpush1.bf16.msra.mxu0 %v4536_v40  ;;  %1396 = vmatpush1.bf16.msra.mxu1 %v4539_v41  ;;  %v4656_v40 = vld [vmem:[#allocation4 + $0x2c0] ss:$16 sps:$4 sm:$0xff]   ;;  %v4658_v41 = vld [vmem:[#allocation4 + $0x2c4] ss:$16 sps:$4 sm:$0xff]  }
 0x12f   :  { %1356 = vmatprep.subr.bf16.mxu0 %v4544_v42  ;;  %1397 = vmatprep.subr.bf16.mxu1 %v4547_v43  ;;  %v4628_v42 = vld [vmem:[#allocation4 + $0x1e4] ss:$16 sps:$4 sm:$0xff]   ;;  %v4626_v43 = vld [vmem:[#allocation4 + $0x1e0] ss:$16 sps:$4 sm:$0xff]  }
 0x132   :  { %1357 = vmatpush1.bf16.msra.mxu0 %v4542_v44  ;;  %1398 = vmatpush1.bf16.msra.mxu1 %v4545_v45  ;;  %v4662_v44 = vld [vmem:[#allocation4 + $0x2a0] ss:$16 sps:$4 sm:$0xff]   ;;  %v4664_v45 = vld [vmem:[#allocation4 + $0x2a4] ss:$16 sps:$4 sm:$0xff]  }
 0x133   :  { %1358 = vmatprep.subr.bf16.mxu0 %v4550_v46  ;;  %1399 = vmatprep.subr.bf16.mxu1 %v4553_v47  ;;  %v4631_v46 = vld [vmem:[#allocation4 + $0x1c4] ss:$16 sps:$4 sm:$0xff]   ;;  %v4629_v47 = vld [vmem:[#allocation4 + $0x1c0] ss:$16 sps:$4 sm:$0xff]  }
 0x136   :  { %1359 = vmatpush1.bf16.msra.mxu0 %v4548_v48  ;;  %1400 = vmatpush1.bf16.msra.mxu1 %v4551_v49  ;;  %v4668_v48 = vld [vmem:[#allocation4 + $0x280] ss:$16 sps:$4 sm:$0xff]   ;;  %v4670_v49 = vld [vmem:[#allocation4 + $0x284] ss:$16 sps:$4 sm:$0xff]  }
 0x137   :  { %1360 = vmatprep.subr.bf16.mxu0 %v4556_v50  ;;  %1401 = vmatprep.subr.bf16.mxu1 %v4559_v51  ;;  %v4634_v50 = vld [vmem:[#allocation4 + $0x1a4] ss:$16 sps:$4 sm:$0xff]   ;;  %v4632_v51 = vld [vmem:[#allocation4 + $0x1a0] ss:$16 sps:$4 sm:$0xff]  }
 0x13a   :  { %1361 = vmatpush2.bf16.msra.mxu0 %v4554_v52  ;;  %1402 = vmatpush2.bf16.msra.mxu1 %v4557_v53  ;;  %v4674_v52 = vld [vmem:[#allocation4 + $0x260] ss:$16 sps:$4 sm:$0xff]   ;;  %v4676_v53 = vld [vmem:[#allocation4 + $0x264] ss:$16 sps:$4 sm:$0xff]  }
 0x13b   :  { %1362 = vmatprep.subr.bf16.mxu0 %v4562_v54  ;;  %1403 = vmatprep.subr.bf16.mxu1 %v4565_v55  ;;  %v4637_v54 = vld [vmem:[#allocation4 + $0x184] ss:$16 sps:$4 sm:$0xff]   ;;  %v4635_v55 = vld [vmem:[#allocation4 + $0x180] ss:$16 sps:$4 sm:$0xff]  }
 0x13e   :  { %1363 = vmatpush2.bf16.msra.mxu0 %v4560_v56  ;;  %1404 = vmatpush2.bf16.msra.mxu1 %v4563_v57  ;;  %v4680_v56 = vld [vmem:[#allocation4 + $0x240] ss:$16 sps:$4 sm:$0xff]   ;;  %v4682_v57 = vld [vmem:[#allocation4 + $0x244] ss:$16 sps:$4 sm:$0xff]  }
 0x13f   :  { %1364 = vmatprep.subr.bf16.mxu0 %v4568_v58  ;;  %1405 = vmatprep.subr.bf16.mxu1 %v4571_v61  ;;  %v4640_v58 = vld [vmem:[#allocation4 + $0x164] ss:$16 sps:$4 sm:$0xff]   ;;  %v4638_v61 = vld [vmem:[#allocation4 + $0x160] ss:$16 sps:$4 sm:$0xff]  }
 0x142   :  { %1365 = vmatpush2.bf16.msra.mxu0 %v4566_v0  ;;  %1406 = vmatpush2.bf16.msra.mxu1 %v4569_v1  ;;  %v4686_v0 = vld [vmem:[#allocation4 + $0x220] ss:$16 sps:$4 sm:$0xff]   ;;  %v4688_v1 = vld [vmem:[#allocation4 + $0x224] ss:$16 sps:$4 sm:$0xff]  }
 0x143   :  { %1366 = vmatprep.subr.bf16.mxu0 %v4574_v2  ;;  %1407 = vmatprep.subr.bf16.mxu1 %v4577_v3  ;;  %v4643_v2 = vld [vmem:[#allocation4 + $0x144] ss:$16 sps:$4 sm:$0xff]   ;;  %v4641_v3 = vld [vmem:[#allocation4 + $0x140] ss:$16 sps:$4 sm:$0xff]  }
 0x146   :  { %1367 = vmatpush2.bf16.msra.mxu0 %v4572_v4  ;;  %1408 = vmatpush2.bf16.msra.mxu1 %v4575_v5  ;;  %v4692_v4 = vld [vmem:[#allocation4 + $0x200] ss:$16 sps:$4 sm:$0xff]   ;;  %v4694_v5 = vld [vmem:[#allocation4 + $0x204] ss:$16 sps:$4 sm:$0xff]  }
 0x147   :  { %1368 = vmatprep.subr.bf16.mxu0 %v4580_v6  ;;  %1409 = vmatprep.subr.bf16.mxu1 %v4583_v7  ;;  %v4646_v6 = vld [vmem:[#allocation4 + $0x124] ss:$16 sps:$4 sm:$0xff]   ;;  %v4644_v7 = vld [vmem:[#allocation4 + $0x120] ss:$16 sps:$4 sm:$0xff]  }
 0x14a   :  { %1369 = vmatpush2.bf16.msra.mxu0 %v4578_v8  ;;  %1410 = vmatpush2.bf16.msra.mxu1 %v4581_v9  ;;  %v4698_v8 = vld [vmem:[#allocation4 + $0x3e0] ss:$16 sps:$4 sm:$0xff]   ;;  %v4700_v9 = vld [vmem:[#allocation4 + $0x3e4] ss:$16 sps:$4 sm:$0xff]  }
 0x14b   :  { %1370 = vmatprep.subr.bf16.mxu0 %v4586_v10  ;;  %1411 = vmatprep.subr.bf16.mxu1 %v4589_v11  ;;  %v4649_v10 = vld [vmem:[#allocation4 + $0x104] ss:$16 sps:$4 sm:$0xff]   ;;  %v4647_v11 = vld [vmem:[#allocation4 + $0x100] ss:$16 sps:$4 sm:$0xff]  }
 0x14e   :  { %1371 = vmatpush2.bf16.msra.mxu0 %v4584_v13  ;;  %1412 = vmatpush2.bf16.msra.mxu1 %v4587_v14  ;;  %v4704_v13 = vld [vmem:[#allocation4 + $0x3c0] ss:$16 sps:$4 sm:$0xff]   ;;  %v4706_v14 = vld [vmem:[#allocation4 + $0x3c4] ss:$16 sps:$4 sm:$0xff]  }
 0x14f   :  { %1372 = vmatprep.subr.bf16.mxu0 %v4592_v15  ;;  %1413 = vmatprep.subr.bf16.mxu1 %v4595_v16  ;;  %v4655_v15 = vld [vmem:[#allocation4 + $0xec] ss:$16 sps:$4 sm:$0xff]   ;;  %v4710_v16 = vld [vmem:[#allocation4 + $0x3a0] ss:$16 sps:$4 sm:$0xff]  }
 0x152   :  { %1373 = vmatpush2.bf16.msra.mxu0 %v4590_v17  ;;  %1414 = vmatpush2.bf16.msra.mxu1 %v4593_v18  ;;  %v4712_v17 = vld [vmem:[#allocation4 + $0x3a4] ss:$16 sps:$4 sm:$0xff]  }
 0x153   :  { %1374 = vmatprep.subr.bf16.mxu0 %v4598_v20  ;;  %1415 = vmatprep.subr.bf16.mxu1 %v4601_v21  ;;  %v4718_v18 = vld [vmem:[#allocation4 + $0x384] ss:$16 sps:$4 sm:$0xff]   ;;  %v4716_v20 = vld [vmem:[#allocation4 + $0x380] ss:$16 sps:$4 sm:$0xff]  }
 0x154   :  { %v4724_v21 = vld [vmem:[#allocation4 + $0x364] ss:$16 sps:$4 sm:$0xff]  }
 0x156   :  { %1375 = vmatpush2.bf16.msra.mxu0 %v4596_v22  ;;  %1416 = vmatpush2.bf16.msra.mxu1 %v4599_v23  ;;  %v4722_v22 = vld [vmem:[#allocation4 + $0x360] ss:$16 sps:$4 sm:$0xff]   ;;  %v4730_v23 = vld [vmem:[#allocation4 + $0x344] ss:$16 sps:$4 sm:$0xff]  }
 0x157   :  { %2224 = vmatprep.subr.bf16.mxu0 %v4604_v24  ;;  %2265 = vmatprep.subr.bf16.mxu1 %v4652_v36  ;;  %v4728_v24 = vld [vmem:[#allocation4 + $0x340] ss:$16 sps:$4 sm:$0xff]  }
 0x159   :  { %1377 = vmatmul.mubr.bf16.vlgmr.msra.gmra.mxu0 %v5402_v19  ;;  %1418 = vmatmul.mubr.bf16.vlgmr.msra.gmra.mxu1 %v5400_v12  ;;  %v4617_v19 = vld [vmem:[#allocation4 + $0x40] ss:$16 sps:$4 sm:$0xff]   ;;  %v4622_v12 = vld [vmem:[#allocation4 + $0x24] ss:$16 sps:$4 sm:$0xff]  }
 0x15a   :  { %2225 = vmatpush1.bf16.msra.mxu0 %v4602_v25  ;;  %2266 = vmatpush1.bf16.msra.mxu1 %v4650_v35  ;;  %v4736_v25 = vld [vmem:[#allocation4 + $0x324] ss:$16 sps:$4 sm:$0xff]  }
 0x15b   :  { %2226 = vmatprep.subr.bf16.mxu0 %v4607_v26  ;;  %2267 = vmatprep.subr.bf16.mxu1 %v4658_v41  ;;  %v4734_v26 = vld [vmem:[#allocation4 + $0x320] ss:$16 sps:$4 sm:$0xff]  }
 0x15e   :  { %2227 = vmatpush1.bf16.msra.mxu0 %v4605_v27  ;;  %2268 = vmatpush1.bf16.msra.mxu1 %v4656_v40  ;;  %v4742_v27 = vld [vmem:[#allocation4 + $0x304] ss:$16 sps:$4 sm:$0xff]  }
 0x15f   :  { %2228 = vmatprep.subr.bf16.mxu0 %v4610_v28  ;;  %2269 = vmatprep.subr.bf16.mxu1 %v4664_v45  ;;  %v4740_v28 = vld [vmem:[#allocation4 + $0x300] ss:$16 sps:$4 sm:$0xff]  }
 0x162   :  { %2229 = vmatpush1.bf16.msra.mxu0 %v4608_v29  ;;  %2270 = vmatpush1.bf16.msra.mxu1 %v4662_v44  ;;  %v4748_v29 = vld [vmem:[#allocation4 + $0x2ec] ss:$16 sps:$4 sm:$0xff]  }
 0x163   :  { %2230 = vmatprep.subr.bf16.mxu0 %v4613_v30  ;;  %2271 = vmatprep.subr.bf16.mxu1 %v4670_v49  ;;  %v5411_v30 = vld [vmem:[%s5671_s4] sm:$0xf]  ;;  %v4659_v49 = vld [vmem:[#allocation4 + $0xc8] ss:$16 sps:$4 sm:$0xff]  }
 0x166   :  { %2231 = vmatpush1.bf16.msra.mxu0 %v4611_v31  ;;  %2272 = vmatpush1.bf16.msra.mxu1 %v4668_v48  ;;  %v605_v31 = vrot.slane %v5411_v30, %v5387_v60  ;;  %v4661_v48 = vld [vmem:[#allocation4 + $0xcc] ss:$16 sps:$4 sm:$0xff]  }
 0x167   :  { %2232 = vmatprep.subr.bf16.mxu0 %v4616_v32  ;;  %2273 = vmatprep.subr.bf16.mxu1 %v4676_v53  ;;  %v609_v32 = vrot.slane %v5411_v30, %v5392_v62  ;;  %v4671_v53 = vld [vmem:[#allocation4 + $0x88] ss:$16 sps:$4 sm:$0xff]  }
 0x16a   :  { %2233 = vmatpush1.bf16.msra.mxu0 %v4614_v33  ;;  %2274 = vmatpush1.bf16.msra.mxu1 %v4674_v52  ;;  %v4673_v52 = vld [vmem:[#allocation4 + $0x8c] ss:$16 sps:$4 sm:$0xff]  }
 0x16b   :  { %2234 = vmatprep.subr.bf16.mxu0 %v4619_v34  ;;  %2275 = vmatprep.subr.bf16.mxu1 %v4682_v57  ;;  %v4683_v57 = vld [vmem:[#allocation4 + $0x48] ss:$16 sps:$4 sm:$0xff]  }
 0x16e   :  { %2235 = vmatpush1.bf16.msra.mxu0 %v4617_v19  ;;  %2276 = vmatpush1.bf16.msra.mxu1 %v4680_v56  ;;  %v4685_v56 = vld [vmem:[#allocation4 + $0x4c] ss:$16 sps:$4 sm:$0xff]  }
 0x16f   :  { %2236 = vmatprep.subr.bf16.mxu0 %v4622_v12  ;;  %2277 = vmatprep.subr.bf16.mxu1 %v4688_v1  ;;  %v4695_v1 = vld [vmem:[#allocation4 + $0x8] ss:$16 sps:$4 sm:$0xff]  }
 0x172   :  { %2237 = vmatpush1.bf16.msra.mxu0 %v4620_v37  ;;  %2278 = vmatpush1.bf16.msra.mxu1 %v4686_v0  ;;  %v4697_v0 = vld [vmem:[#allocation4 + $0xc] ss:$16 sps:$4 sm:$0xff]  }
 0x173   :  { %2238 = vmatprep.subr.bf16.mxu0 %v4625_v38  ;;  %2279 = vmatprep.subr.bf16.mxu1 %v4694_v5  ;;  %v4707_v5 = vld [vmem:[#allocation4 + $0x1c8] ss:$16 sps:$4 sm:$0xff]  }
 0x176   :  { %2239 = vmatpush1.bf16.msra.mxu0 %v4623_v39  ;;  %2280 = vmatpush1.bf16.msra.mxu1 %v4692_v4  ;;  %v4709_v4 = vld [vmem:[#allocation4 + $0x1cc] ss:$16 sps:$4 sm:$0xff]  }
 0x177   :  { %2240 = vmatprep.subr.bf16.mxu0 %v4628_v42  ;;  %2281 = vmatprep.subr.bf16.mxu1 %v4700_v9  ;;  %v4721_v9 = vld [vmem:[#allocation4 + $0x18c] ss:$16 sps:$4 sm:$0xff]  }
 0x17a   :  { %2241 = vmatpush2.bf16.msra.mxu0 %v4626_v43  ;;  %2282 = vmatpush2.bf16.msra.mxu1 %v4698_v8  ;;  %v4713_v8 = vld [vmem:[#allocation4 + $0x1a8] ss:$16 sps:$4 sm:$0xff]  }
 0x17b   :  { %2242 = vmatprep.subr.bf16.mxu0 %v4631_v46  ;;  %2283 = vmatprep.subr.bf16.mxu1 %v4706_v14  ;;  %v4653_v46 = vld [vmem:[#allocation4 + $0xe8] ss:$16 sps:$4 sm:$0xff]  }
 0x17e   :  { %2243 = vmatpush2.bf16.msra.mxu0 %v4629_v47  ;;  %2284 = vmatpush2.bf16.msra.mxu1 %v4704_v13 }
 0x17f   :  { %2244 = vmatprep.subr.bf16.mxu0 %v4634_v50  ;;  %2285 = vmatprep.subr.bf16.mxu1 %v4712_v17  ;;  %v4667_v50 = vld [vmem:[#allocation4 + $0xac] ss:$16 sps:$4 sm:$0xff]  }
 0x182   :  { %2245 = vmatpush2.bf16.msra.mxu0 %v4632_v51  ;;  %2286 = vmatpush2.bf16.msra.mxu1 %v4710_v16  ;;  %v4665_v51 = vld [vmem:[#allocation4 + $0xa8] ss:$16 sps:$4 sm:$0xff]  }
 0x183   :  { %2246 = vmatprep.subr.bf16.mxu0 %v4637_v54  ;;  %2287 = vmatprep.subr.bf16.mxu1 %v4718_v18  ;;  %v4679_v54 = vld [vmem:[#allocation4 + $0x6c] ss:$16 sps:$4 sm:$0xff]  }
 0x184   :  { %v4727_v18 = vld [vmem:[#allocation4 + $0x16c] ss:$16 sps:$4 sm:$0xff]  }
 0x186   :  { %2247 = vmatpush2.bf16.msra.mxu0 %v4635_v55  ;;  %2288 = vmatpush2.bf16.msra.mxu1 %v4716_v20  ;;  %v4677_v55 = vld [vmem:[#allocation4 + $0x68] ss:$16 sps:$4 sm:$0xff]  }
 0x187   :  { %2248 = vmatprep.subr.bf16.mxu0 %v4640_v58  ;;  %2289 = vmatprep.subr.bf16.mxu1 %v4724_v21  ;;  %v4691_v58 = vld [vmem:[#allocation4 + $0x2c] ss:$16 sps:$4 sm:$0xff]  }
 0x18a   :  { %2249 = vmatpush2.bf16.msra.mxu0 %v4638_v61  ;;  %2290 = vmatpush2.bf16.msra.mxu1 %v4722_v22  ;;  %v4689_v61 = vld [vmem:[#allocation4 + $0x28] ss:$16 sps:$4 sm:$0xff]  }
 0x18b   :  { %2250 = vmatprep.subr.bf16.mxu0 %v4643_v2  ;;  %2291 = vmatprep.subr.bf16.mxu1 %v4730_v23  ;;  %v4703_v2 = vld [vmem:[#allocation4 + $0x1ec] ss:$16 sps:$4 sm:$0xff]  }
 0x18e   :  { %2251 = vmatpush2.bf16.msra.mxu0 %v4641_v3  ;;  %2292 = vmatpush2.bf16.msra.mxu1 %v4728_v24  ;;  %v4701_v3 = vld [vmem:[#allocation4 + $0x1e8] ss:$16 sps:$4 sm:$0xff]  }
 0x18f   :  { %2252 = vmatprep.subr.bf16.mxu0 %v4646_v6  ;;  %2293 = vmatprep.subr.bf16.mxu1 %v4736_v25  ;;  %v4715_v6 = vld [vmem:[#allocation4 + $0x1ac] ss:$16 sps:$4 sm:$0xff]   ;;  %v4725_v25 = vld [vmem:[#allocation4 + $0x168] ss:$16 sps:$4 sm:$0xff]  }
 0x192   :  { %2253 = vmatpush2.bf16.msra.mxu0 %v4644_v7  ;;  %2294 = vmatpush2.bf16.msra.mxu1 %v4734_v26  ;;  %v613_v7 = vrot.slane %v5411_v30, %v5385_v59 }
 0x193   :  { %2254 = vmatprep.subr.bf16.mxu0 %v4649_v10  ;;  %2295 = vmatprep.subr.bf16.mxu1 %v4742_v27  ;;  %v617_v10 = vrot.slane %v5411_v30, %v5394_v63  ;;  %v4739_v30 = vld [vmem:[#allocation4 + $0x12c] ss:$16 sps:$4 sm:$0xff]  }
 0x196   :  { %2255 = vmatpush2.bf16.msra.mxu0 %v4647_v11  ;;  %2296 = vmatpush2.bf16.msra.mxu1 %v4740_v28  ;;  %v4733_v28 = vld [vmem:[#allocation4 + $0x14c] ss:$16 sps:$4 sm:$0xff]  }
 0x197   :  { %2306 = vmatprep.subr.bf16.mxu0 %v4655_v15  ;;  %2347 = vmatprep.subr.bf16.mxu1 %v4748_v29  ;;  %v4719_v15 = vld [vmem:[#allocation4 + $0x188] ss:$16 sps:$4 sm:$0xff]  }
 0x198   :  { %v4731_v29 = vld [vmem:[#allocation4 + $0x148] ss:$16 sps:$4 sm:$0xff]  }
 0x1d9   :  { %v1296_v33 = vpop.f32.mrf.mxu0  ;;  %v1337_v34 = vpop.f32.mrf.mxu1 }
 0x1da   :  { %v1297_v19 = vadd.f32 %v1296_v33, %v605_v31  ;;  %v4737_v31 = vld [vmem:[#allocation4 + $0x128] ss:$16 sps:$4 sm:$0xff]  }
 0x1db   :  { %v1298_v12 = vpop.f32.mrf.mxu0  ;;  %v1339_v35 = vpop.f32.mrf.mxu1  ;;  %v4743_v33 = vld [vmem:[#allocation4 + $0x108] ss:$16 sps:$4 sm:$0xff]  }
 0x1dc   :  { %v1338_v36 = vadd.f32 %v1337_v34, %v1297_v19  ;;  %v1299_v37 = vadd.f32 %v1298_v12, %v609_v32  ;;  %v4745_v32 = vld [vmem:[#allocation4 + $0x10c] ss:$16 sps:$4 sm:$0xff]  }
 0x1dd   :  { %v1300_v38 = vpop.f32.mrf.mxu0  ;;  %v1341_v39 = vpop.f32.mrf.mxu1 }
 0x1de   :  { %v1340_v40 = vadd.f32 %v1339_v35, %v1299_v37  ;;  %5082 = vtanh.f32 %v1338_v36  ;;  %v4746_v35 = vld [vmem:[#allocation4 + $0x2e8] ss:$16 sps:$4 sm:$0xff]   ;;  %v4751_v37 = vld [vmem:[#allocation4 + $0x2cc] ss:$16 sps:$4 sm:$0xff]  }
 0x1df   :  { %v1301_v41 = vpop.f32.mrf.mxu0  ;;  %v1342_v42 = vpop.f32.mrf.mxu1  ;;  %v4749_v38 = vld [vmem:[#allocation4 + $0x2c8] ss:$16 sps:$4 sm:$0xff]   ;;  %v4754_v39 = vld [vmem:[#allocation4 + $0x2ac] ss:$16 sps:$4 sm:$0xff]  }
 0x1e0   :  { %5084 = vtanh.f32 %v1340_v40  ;;  %v4752_v40 = vld [vmem:[#allocation4 + $0x2a8] ss:$16 sps:$4 sm:$0xff]   ;;  %v4757_v41 = vld [vmem:[#allocation4 + $0x28c] ss:$16 sps:$4 sm:$0xff]   ;;  %v4794_v42 = vld [vmem:[#allocation6 + $0xe0] ss:$16 sps:$4 sm:$0xff]  }
 0x1eb   :  { %v5083_v43 = vpop.eup %5082 }
 0x1ec   :  { %v5417_v47 = vpack.c.bf16 %v5083_v43, %v5083_v43  ;;  %v4796_v43 = vld [vmem:[#allocation6 + $0xe4] ss:$16 sps:$4 sm:$0xff]  }
 0x1ed   :  { %v5085_v44 = vpop.eup %5084 }
 0x1ee   :  { %v1431_v45 = vpack.c.bf16 %v5085_v44, %v5085_v44  ;;  %v4799_v44 = vld [vmem:[#allocation6 + $0xc4] ss:$16 sps:$4 sm:$0xff]  }
 0x1f0   :  { %2256 = vmatprep.mubr.bf16.mxu0 %v1431_v45 }
 0x1f1   :  { %2257 = vmatmul.mubr.bf16.vlgmr.msra.gmra.mxu0 %v5417_v47 }
 0x1f2   :  { %2307 = vmatpush1.bf16.msra.mxu0 %v4653_v46  ;;  %2338 = vmatprep.mubr.bf16.mxu0 %v1431_v45  ;;  %v4755_v45 = vld [vmem:[#allocation4 + $0x288] ss:$16 sps:$4 sm:$0xff]   ;;  %v4797_v46 = vld [vmem:[#allocation6 + $0xc0] ss:$16 sps:$4 sm:$0xff]  }
 0x1f3   :  { %2308 = vmatprep.subr.bf16.mxu0 %v4661_v48  ;;  %v4760_v48 = vld [vmem:[#allocation4 + $0x26c] ss:$16 sps:$4 sm:$0xff]  }
 0x1f6   :  { %2309 = vmatpush1.bf16.msra.mxu0 %v4659_v49  ;;  %v4758_v49 = vld [vmem:[#allocation4 + $0x268] ss:$16 sps:$4 sm:$0xff]  }
 0x1f7   :  { %2310 = vmatprep.subr.bf16.mxu0 %v4667_v50  ;;  %v4800_v50 = vld [vmem:[#allocation6 + $0xa0] ss:$16 sps:$4 sm:$0xff]  }
 0x1fa   :  { %2311 = vmatpush1.bf16.msra.mxu0 %v4665_v51  ;;  %v4763_v51 = vld [vmem:[#allocation4 + $0x24c] ss:$16 sps:$4 sm:$0xff]  }
 0x1fb   :  { %2312 = vmatprep.subr.bf16.mxu0 %v4673_v52  ;;  %v4805_v52 = vld [vmem:[#allocation6 + $0x84] ss:$16 sps:$4 sm:$0xff]  }
 0x1fe   :  { %2313 = vmatpush1.bf16.msra.mxu0 %v4671_v53  ;;  %v4761_v53 = vld [vmem:[#allocation4 + $0x248] ss:$16 sps:$4 sm:$0xff]  }
 0x1ff   :  { %2314 = vmatprep.subr.bf16.mxu0 %v4679_v54  ;;  %v4803_v54 = vld [vmem:[#allocation6 + $0x80] ss:$16 sps:$4 sm:$0xff]  }
 0x202   :  { %2315 = vmatpush1.bf16.msra.mxu0 %v4677_v55  ;;  %v4766_v55 = vld [vmem:[#allocation4 + $0x22c] ss:$16 sps:$4 sm:$0xff]  }
 0x203   :  { %2316 = vmatprep.subr.bf16.mxu0 %v4685_v56  ;;  %v4808_v56 = vld [vmem:[#allocation6 + $0x64] ss:$16 sps:$4 sm:$0xff]  }
 0x206   :  { %2317 = vmatpush1.bf16.msra.mxu0 %v4683_v57  ;;  %v4764_v57 = vld [vmem:[#allocation4 + $0x228] ss:$16 sps:$4 sm:$0xff]  }
 0x207   :  { %2318 = vmatprep.subr.bf16.mxu0 %v4691_v58  ;;  %v4806_v58 = vld [vmem:[#allocation6 + $0x60] ss:$16 sps:$4 sm:$0xff]  }
 0x20a   :  { %2319 = vmatpush1.bf16.msra.mxu0 %v4689_v61  ;;  %v4769_v61 = vld [vmem:[#allocation4 + $0x20c] ss:$16 sps:$4 sm:$0xff]  }
 0x20b   :  { %2320 = vmatprep.subr.bf16.mxu0 %v4697_v0  ;;  %v4811_v0 = vld [vmem:[#allocation6 + $0x44] ss:$16 sps:$4 sm:$0xff]  }
 0x20e   :  { %2321 = vmatpush1.bf16.msra.mxu0 %v4695_v1  ;;  %v4767_v1 = vld [vmem:[#allocation4 + $0x208] ss:$16 sps:$4 sm:$0xff]  }
 0x20f   :  { %2322 = vmatprep.subr.bf16.mxu0 %v4703_v2  ;;  %v4809_v2 = vld [vmem:[#allocation6 + $0x40] ss:$16 sps:$4 sm:$0xff]  }
 0x212   :  { %2323 = vmatpush2.bf16.msra.mxu0 %v4701_v3  ;;  %v4772_v3 = vld [vmem:[#allocation4 + $0x3ec] ss:$16 sps:$4 sm:$0xff]  }
 0x213   :  { %2324 = vmatprep.subr.bf16.mxu0 %v4709_v4  ;;  %v4814_v4 = vld [vmem:[#allocation6 + $0x24] ss:$16 sps:$4 sm:$0xff]  }
 0x216   :  { %2325 = vmatpush2.bf16.msra.mxu0 %v4707_v5  ;;  %v4770_v5 = vld [vmem:[#allocation4 + $0x3e8] ss:$16 sps:$4 sm:$0xff]  }
 0x217   :  { %2326 = vmatprep.subr.bf16.mxu0 %v4715_v6  ;;  %v4812_v6 = vld [vmem:[#allocation6 + $0x20] ss:$16 sps:$4 sm:$0xff]  }
 0x219   :  { %v1378_v11 = vpop.f32.mrf.mxu0  ;;  %v1419_v13 = vpop.f32.mrf.mxu1 }
 0x21a   :  { %v1379_v14 = vadd.f32 %v1378_v11, %v613_v7  ;;  %2327 = vmatpush2.bf16.msra.mxu0 %v4713_v8  ;;  %v4775_v7 = vld [vmem:[#allocation4 + $0x3cc] ss:$16 sps:$4 sm:$0xff]   ;;  %v4817_v8 = vld [vmem:[#allocation6 + $0x4] ss:$16 sps:$4 sm:$0xff]  }
 0x21b   :  { %v1380_v16 = vpop.f32.mrf.mxu0  ;;  %v1421_v17 = vpop.f32.mrf.mxu1  ;;  %2328 = vmatprep.subr.bf16.mxu0 %v4721_v9  ;;  %v4773_v9 = vld [vmem:[#allocation4 + $0x3c8] ss:$16 sps:$4 sm:$0xff]   ;;  %v4778_v11 = vld [vmem:[#allocation4 + $0x3ac] ss:$16 sps:$4 sm:$0xff]  }
 0x21c   :  { %v1420_v20 = vadd.f32 %v1419_v13, %v1379_v14  ;;  %v1381_v21 = vadd.f32 %v1380_v16, %v617_v10  ;;  %v4815_v10 = vld [vmem:[#allocation6] ss:$16 sps:$4 sm:$0xff]   ;;  %v4820_v13 = vld [vmem:[#allocation6 + $0x1e4] ss:$16 sps:$4 sm:$0xff]   ;;  %v4776_v14 = vld [vmem:[#allocation4 + $0x3a8] ss:$16 sps:$4 sm:$0xff]  }
 0x21d   :  { %v1382_v22 = vpop.f32.mrf.mxu0  ;;  %v1423_v23 = vpop.f32.mrf.mxu1  ;;  %v4781_v16 = vld [vmem:[#allocation4 + $0x38c] ss:$16 sps:$4 sm:$0xff]  }
 0x21e   :  { %v1422_v24 = vadd.f32 %v1421_v17, %v1381_v21  ;;  %2329 = vmatpush2.bf16.msra.mxu0 %v4719_v15  ;;  %5086 = vtanh.f32 %v1420_v20  ;;  %v4818_v15 = vld [vmem:[#allocation6 + $0x1e0] ss:$16 sps:$4 sm:$0xff]   ;;  %v4823_v17 = vld [vmem:[#allocation6 + $0x1c4] ss:$16 sps:$4 sm:$0xff]   ;;  %v4784_v21 = vld [vmem:[#allocation4 + $0x36c] ss:$16 sps:$4 sm:$0xff]  }
 0x21f   :  { %v1383_v26 = vpop.f32.mrf.mxu0  ;;  %v1424_v27 = vpop.f32.mrf.mxu1  ;;  %2330 = vmatprep.subr.bf16.mxu0 %v4727_v18  ;;  %v4779_v18 = vld [vmem:[#allocation4 + $0x388] ss:$16 sps:$4 sm:$0xff]   ;;  %v4821_v20 = vld [vmem:[#allocation6 + $0x1c0] ss:$16 sps:$4 sm:$0xff]   ;;  %v4826_v22 = vld [vmem:[#allocation6 + $0x1a4] ss:$16 sps:$4 sm:$0xff]  }
 0x220   :  { %5088 = vtanh.f32 %v1422_v24  ;;  %v4782_v23 = vld [vmem:[#allocation4 + $0x368] ss:$16 sps:$4 sm:$0xff]   ;;  %v4824_v24 = vld [vmem:[#allocation6 + $0x1a0] ss:$16 sps:$4 sm:$0xff]   ;;  %v4790_v27 = vld [vmem:[#allocation4 + $0x32c] ss:$16 sps:$4 sm:$0xff]  }
 0x221   :  { %v4785_v26 = vld [vmem:[#allocation4 + $0x348] ss:$16 sps:$4 sm:$0xff]  }
 0x222   :  { %2331 = vmatpush2.bf16.msra.mxu0 %v4725_v25  ;;  %v4787_v25 = vld [vmem:[#allocation4 + $0x34c] ss:$16 sps:$4 sm:$0xff]  }
 0x223   :  { %2332 = vmatprep.subr.bf16.mxu0 %v4733_v28  ;;  %v4788_v28 = vld [vmem:[#allocation4 + $0x328] ss:$16 sps:$4 sm:$0xff]  }
 0x226   :  { %2333 = vmatpush2.bf16.msra.mxu0 %v4731_v29  ;;  %v4793_v29 = vld [vmem:[#allocation4 + $0x30c] ss:$16 sps:$4 sm:$0xff]  }
 0x227   :  { %2334 = vmatprep.subr.bf16.mxu0 %v4739_v30  ;;  %v4791_v30 = vld [vmem:[#allocation4 + $0x308] ss:$16 sps:$4 sm:$0xff]  }
 0x22a   :  { %2335 = vmatpush2.bf16.msra.mxu0 %v4737_v31  ;;  %v4829_v31 = vld [vmem:[#allocation6 + $0x184] ss:$16 sps:$4 sm:$0xff]  }
 0x22b   :  { %2336 = vmatprep.subr.bf16.mxu0 %v4745_v32  ;;  %v5087_v34 = vpop.eup %5086  ;;  %v4827_v32 = vld [vmem:[#allocation6 + $0x180] ss:$16 sps:$4 sm:$0xff]  }
 0x22c   :  { %v5424_v36 = vpack.c.bf16 %v5087_v34, %v5087_v34  ;;  %v4830_v34 = vld [vmem:[#allocation6 + $0x160] ss:$16 sps:$4 sm:$0xff]  }
 0x22d   :  { %v5089_v19 = vpop.eup %5088 }
 0x22e   :  { %2337 = vmatpush2.bf16.msra.mxu0 %v4743_v33  ;;  %v1433_v12 = vpack.c.bf16 %v5089_v19, %v5089_v19  ;;  %v4832_v33 = vld [vmem:[#allocation6 + $0x164] ss:$16 sps:$4 sm:$0xff]  }
 0x22f   :  { %3186 = vmatprep.subr.bf16.mxu0 %v4796_v43  ;;  %v4835_v19 = vld [vmem:[#allocation6 + $0x144] ss:$16 sps:$4 sm:$0xff]  }
 0x230   :  { %2297 = vmatprep.mubr.bf16.mxu1 %v1433_v12  ;;  %v4850_v43 = vld [vmem:[#allocation6 + $0x2c4] ss:$16 sps:$4 sm:$0xff]  }
 0x231   :  { %2298 = vmatmul.mubr.bf16.vlgmr.msra.gmra.mxu1 %v5424_v36  ;;  %2339 = vmatmul.mubr.bf16.vlgmr.msra.gmra.mxu0 %v5417_v47  ;;  %v4802_v47 = vld [vmem:[#allocation6 + $0xa4] ss:$16 sps:$4 sm:$0xff]  }
 0x232   :  { %2348 = vmatpush1.bf16.msra.mxu1 %v4746_v35  ;;  %2379 = vmatprep.mubr.bf16.mxu1 %v1433_v12  ;;  %v4833_v12 = vld [vmem:[#allocation6 + $0x140] ss:$16 sps:$4 sm:$0xff]   ;;  %v4838_v35 = vld [vmem:[#allocation6 + $0x124] ss:$16 sps:$4 sm:$0xff]  }
 0x233   :  { %2349 = vmatprep.subr.bf16.mxu1 %v4751_v37  ;;  %3187 = vmatpush1.bf16.msra.mxu0 %v4794_v42  ;;  %v4836_v37 = vld [vmem:[#allocation6 + $0x120] ss:$16 sps:$4 sm:$0xff]  }
 0x234   :  { %3188 = vmatprep.subr.bf16.mxu0 %v4799_v44  ;;  %v4848_v42 = vld [vmem:[#allocation6 + $0x2c0] ss:$16 sps:$4 sm:$0xff]  }
 0x235   :  { %v4854_v44 = vld [vmem:[#allocation6 + $0x2a0] ss:$16 sps:$4 sm:$0xff]  }
 0x236   :  { %2350 = vmatpush1.bf16.msra.mxu1 %v4749_v38  ;;  %v4841_v38 = vld [vmem:[#allocation6 + $0x104] ss:$16 sps:$4 sm:$0xff]  }
 0x237   :  { %2351 = vmatprep.subr.bf16.mxu1 %v4754_v39  ;;  %3189 = vmatpush1.bf16.msra.mxu0 %v4797_v46  ;;  %v4839_v39 = vld [vmem:[#allocation6 + $0x100] ss:$16 sps:$4 sm:$0xff]  }
 0x238   :  { %3190 = vmatprep.subr.bf16.mxu0 %v4802_v47  ;;  %v4860_v46 = vld [vmem:[#allocation6 + $0x280] ss:$16 sps:$4 sm:$0xff]  }
 0x239   :  { %v4866_v47 = vld [vmem:[#allocation6 + $0x260] ss:$16 sps:$4 sm:$0xff]  }
 0x23a   :  { %2352 = vmatpush1.bf16.msra.mxu1 %v4752_v40  ;;  %v4842_v40 = vld [vmem:[#allocation6 + $0x2e0] ss:$16 sps:$4 sm:$0xff]  }
 0x23b   :  { %2353 = vmatprep.subr.bf16.mxu1 %v4757_v41  ;;  %3191 = vmatpush1.bf16.msra.mxu0 %v4800_v50  ;;  %v4847_v41 = vld [vmem:[#allocation6 + $0xec] ss:$16 sps:$4 sm:$0xff]   ;;  %v4872_v50 = vld [vmem:[#allocation6 + $0x240] ss:$16 sps:$4 sm:$0xff]  }
 0x23c   :  { %3192 = vmatprep.subr.bf16.mxu0 %v4805_v52  ;;  %v4878_v52 = vld [vmem:[#allocation6 + $0x220] ss:$16 sps:$4 sm:$0xff]  }
 0x23e   :  { %2354 = vmatpush1.bf16.msra.mxu1 %v4755_v45  ;;  %v4856_v45 = vld [vmem:[#allocation6 + $0x2a4] ss:$16 sps:$4 sm:$0xff]  }
 0x23f   :  { %2355 = vmatprep.subr.bf16.mxu1 %v4760_v48  ;;  %3193 = vmatpush1.bf16.msra.mxu0 %v4803_v54  ;;  %v4862_v48 = vld [vmem:[#allocation6 + $0x284] ss:$16 sps:$4 sm:$0xff]   ;;  %v4884_v54 = vld [vmem:[#allocation6 + $0x200] ss:$16 sps:$4 sm:$0xff]  }
 0x240   :  { %3194 = vmatprep.subr.bf16.mxu0 %v4808_v56  ;;  %v4890_v56 = vld [vmem:[#allocation6 + $0x3e0] ss:$16 sps:$4 sm:$0xff]  }
 0x242   :  { %2356 = vmatpush1.bf16.msra.mxu1 %v4758_v49  ;;  %v4868_v49 = vld [vmem:[#allocation6 + $0x264] ss:$16 sps:$4 sm:$0xff]  }
 0x243   :  { %2357 = vmatprep.subr.bf16.mxu1 %v4763_v51  ;;  %3195 = vmatpush1.bf16.msra.mxu0 %v4806_v58  ;;  %v4874_v51 = vld [vmem:[#allocation6 + $0x244] ss:$16 sps:$4 sm:$0xff]   ;;  %v4896_v58 = vld [vmem:[#allocation6 + $0x3c0] ss:$16 sps:$4 sm:$0xff]  }
 0x244   :  { %3196 = vmatprep.subr.bf16.mxu0 %v4811_v0  ;;  %v4902_v0 = vld [vmem:[#allocation6 + $0x3a0] ss:$16 sps:$4 sm:$0xff]  }
 0x246   :  { %2358 = vmatpush1.bf16.msra.mxu1 %v4761_v53  ;;  %v4880_v53 = vld [vmem:[#allocation6 + $0x224] ss:$16 sps:$4 sm:$0xff]  }
 0x247   :  { %2359 = vmatprep.subr.bf16.mxu1 %v4766_v55  ;;  %3197 = vmatpush1.bf16.msra.mxu0 %v4809_v2  ;;  %v4886_v55 = vld [vmem:[#allocation6 + $0x204] ss:$16 sps:$4 sm:$0xff]  }
 0x248   :  { %3198 = vmatprep.subr.bf16.mxu0 %v4814_v4  ;;  %v4910_v2 = vld [vmem:[#allocation6 + $0x384] ss:$16 sps:$4 sm:$0xff]   ;;  %v4908_v4 = vld [vmem:[#allocation6 + $0x380] ss:$16 sps:$4 sm:$0xff]  }
 0x24a   :  { %2360 = vmatpush1.bf16.msra.mxu1 %v4764_v57  ;;  %v4892_v57 = vld [vmem:[#allocation6 + $0x3e4] ss:$16 sps:$4 sm:$0xff]  }
 0x24b   :  { %2361 = vmatprep.subr.bf16.mxu1 %v4769_v61  ;;  %3199 = vmatpush1.bf16.msra.mxu0 %v4812_v6  ;;  %v4898_v61 = vld [vmem:[#allocation6 + $0x3c4] ss:$16 sps:$4 sm:$0xff]  }
 0x24c   :  { %3200 = vmatprep.subr.bf16.mxu0 %v4817_v8  ;;  %v4916_v6 = vld [vmem:[#allocation6 + $0x364] ss:$16 sps:$4 sm:$0xff]   ;;  %v4914_v8 = vld [vmem:[#allocation6 + $0x360] ss:$16 sps:$4 sm:$0xff]  }
 0x24e   :  { %2362 = vmatpush1.bf16.msra.mxu1 %v4767_v1  ;;  %v4904_v1 = vld [vmem:[#allocation6 + $0x3a4] ss:$16 sps:$4 sm:$0xff]  }
 0x24f   :  { %2363 = vmatprep.subr.bf16.mxu1 %v4772_v3  ;;  %3201 = vmatpush1.bf16.msra.mxu0 %v4815_v10  ;;  %v4922_v10 = vld [vmem:[#allocation6 + $0x344] ss:$16 sps:$4 sm:$0xff]  }
 0x250   :  { %3202 = vmatprep.subr.bf16.mxu0 %v4820_v13  ;;  %v4928_v13 = vld [vmem:[#allocation6 + $0x324] ss:$16 sps:$4 sm:$0xff]  }
 0x252   :  { %2364 = vmatpush2.bf16.msra.mxu1 %v4770_v5 }
 0x253   :  { %2365 = vmatprep.subr.bf16.mxu1 %v4775_v7  ;;  %3203 = vmatpush2.bf16.msra.mxu0 %v4818_v15  ;;  %v4934_v15 = vld [vmem:[#allocation6 + $0x304] ss:$16 sps:$4 sm:$0xff]  }
 0x254   :  { %3204 = vmatprep.subr.bf16.mxu0 %v4823_v17  ;;  %v4940_v17 = vld [vmem:[#allocation6 + $0x2ec] ss:$16 sps:$4 sm:$0xff]  }
 0x256   :  { %2366 = vmatpush2.bf16.msra.mxu1 %v4773_v9 }
 0x257   :  { %2367 = vmatprep.subr.bf16.mxu1 %v4778_v11  ;;  %3205 = vmatpush2.bf16.msra.mxu0 %v4821_v20  ;;  %v4920_v11 = vld [vmem:[#allocation6 + $0x340] ss:$16 sps:$4 sm:$0xff]  }
 0x258   :  { %3206 = vmatprep.subr.bf16.mxu0 %v4826_v22 }
 0x25a   :  { %2368 = vmatpush2.bf16.msra.mxu1 %v4776_v14  ;;  %v4926_v14 = vld [vmem:[#allocation6 + $0x320] ss:$16 sps:$4 sm:$0xff]  }
 0x25b   :  { %2369 = vmatprep.subr.bf16.mxu1 %v4781_v16  ;;  %3207 = vmatpush2.bf16.msra.mxu0 %v4824_v24  ;;  %v4932_v16 = vld [vmem:[#allocation6 + $0x300] ss:$16 sps:$4 sm:$0xff]  }
 0x25c   :  { %3208 = vmatprep.subr.bf16.mxu0 %v4829_v31 }
 0x25e   :  { %2370 = vmatpush2.bf16.msra.mxu1 %v4779_v18  ;;  %v5432_v18 = vld [vmem:[%s5673_s6] sm:$0xf] }
 0x25f   :  { %2371 = vmatprep.subr.bf16.mxu1 %v4784_v21  ;;  %3209 = vmatpush2.bf16.msra.mxu0 %v4827_v32  ;;  %v1567_v20 = vrot.slane %v5432_v18, %v5387_v60  ;;  %v1571_v21 = vrot.slane %v5432_v18, %v5392_v62 }
 0x260   :  { %3210 = vmatprep.subr.bf16.mxu0 %v4832_v33 }
 0x262   :  { %2372 = vmatpush2.bf16.msra.mxu1 %v4782_v23 }
 0x263   :  { %2373 = vmatprep.subr.bf16.mxu1 %v4787_v25  ;;  %3211 = vmatpush2.bf16.msra.mxu0 %v4830_v34 }
 0x264   :  { %3212 = vmatprep.subr.bf16.mxu0 %v4835_v19 }
 0x266   :  { %2374 = vmatpush2.bf16.msra.mxu1 %v4785_v26 }
 0x267   :  { %2375 = vmatprep.subr.bf16.mxu1 %v4790_v27  ;;  %3213 = vmatpush2.bf16.msra.mxu0 %v4833_v12 }
 0x268   :  { %3214 = vmatprep.subr.bf16.mxu0 %v4838_v35  ;;  %v4845_v35 = vld [vmem:[#allocation6 + $0xe8] ss:$16 sps:$4 sm:$0xff]  }
 0x26a   :  { %2376 = vmatpush2.bf16.msra.mxu1 %v4788_v28 }
 0x26b   :  { %2377 = vmatprep.subr.bf16.mxu1 %v4793_v29  ;;  %3215 = vmatpush2.bf16.msra.mxu0 %v4836_v37 }
 0x26c   :  { %3216 = vmatprep.subr.bf16.mxu0 %v4841_v38  ;;  %v4853_v38 = vld [vmem:[#allocation6 + $0xcc] ss:$16 sps:$4 sm:$0xff]  }
 0x26e   :  { %2378 = vmatpush2.bf16.msra.mxu1 %v4791_v30 }
 0x26f   :  { %3217 = vmatpush2.bf16.msra.mxu0 %v4839_v39  ;;  %v4851_v39 = vld [vmem:[#allocation6 + $0xc8] ss:$16 sps:$4 sm:$0xff]  }
 0x270   :  { %3268 = vmatprep.subr.bf16.mxu0 %v4847_v41  ;;  %v4865_v41 = vld [vmem:[#allocation6 + $0x8c] ss:$16 sps:$4 sm:$0xff]  }
 0x271   :  { %2380 = vmatmul.mubr.bf16.vlgmr.msra.gmra.mxu1 %v5424_v36  ;;  %v4844_v36 = vld [vmem:[#allocation6 + $0x2e4] ss:$16 sps:$4 sm:$0xff]  }
 0x272   :  { %3227 = vmatprep.subr.bf16.mxu1 %v4844_v36  ;;  %v4857_v36 = vld [vmem:[#allocation6 + $0xa8] ss:$16 sps:$4 sm:$0xff]  }
 0x273   :  { %3228 = vmatpush1.bf16.msra.mxu1 %v4842_v40  ;;  %v4859_v40 = vld [vmem:[#allocation6 + $0xac] ss:$16 sps:$4 sm:$0xff]  }
 0x274   :  { %3229 = vmatprep.subr.bf16.mxu1 %v4850_v43  ;;  %v4871_v43 = vld [vmem:[#allocation6 + $0x6c] ss:$16 sps:$4 sm:$0xff]  }
 0x277   :  { %3230 = vmatpush1.bf16.msra.mxu1 %v4848_v42  ;;  %v4863_v42 = vld [vmem:[#allocation6 + $0x88] ss:$16 sps:$4 sm:$0xff]  }
 0x278   :  { %3231 = vmatprep.subr.bf16.mxu1 %v4856_v45  ;;  %v4877_v45 = vld [vmem:[#allocation6 + $0x4c] ss:$16 sps:$4 sm:$0xff]  }
 0x27b   :  { %3232 = vmatpush1.bf16.msra.mxu1 %v4854_v44  ;;  %v4869_v44 = vld [vmem:[#allocation6 + $0x68] ss:$16 sps:$4 sm:$0xff]  }
 0x27c   :  { %3233 = vmatprep.subr.bf16.mxu1 %v4862_v48  ;;  %v4883_v48 = vld [vmem:[#allocation6 + $0x2c] ss:$16 sps:$4 sm:$0xff]  }
 0x27f   :  { %3234 = vmatpush1.bf16.msra.mxu1 %v4860_v46  ;;  %v4875_v46 = vld [vmem:[#allocation6 + $0x48] ss:$16 sps:$4 sm:$0xff]  }
 0x280   :  { %3235 = vmatprep.subr.bf16.mxu1 %v4868_v49  ;;  %v4889_v49 = vld [vmem:[#allocation6 + $0xc] ss:$16 sps:$4 sm:$0xff]  }
 0x283   :  { %3236 = vmatpush1.bf16.msra.mxu1 %v4866_v47  ;;  %v4881_v47 = vld [vmem:[#allocation6 + $0x28] ss:$16 sps:$4 sm:$0xff]  }
 0x284   :  { %3237 = vmatprep.subr.bf16.mxu1 %v4874_v51  ;;  %v4895_v51 = vld [vmem:[#allocation6 + $0x1ec] ss:$16 sps:$4 sm:$0xff]  }
 0x287   :  { %3238 = vmatpush1.bf16.msra.mxu1 %v4872_v50  ;;  %v4887_v50 = vld [vmem:[#allocation6 + $0x8] ss:$16 sps:$4 sm:$0xff]  }
 0x288   :  { %3239 = vmatprep.subr.bf16.mxu1 %v4880_v53  ;;  %v4901_v53 = vld [vmem:[#allocation6 + $0x1cc] ss:$16 sps:$4 sm:$0xff]  }
 0x28b   :  { %3240 = vmatpush1.bf16.msra.mxu1 %v4878_v52  ;;  %v4893_v52 = vld [vmem:[#allocation6 + $0x1e8] ss:$16 sps:$4 sm:$0xff]  }
 0x28c   :  { %3241 = vmatprep.subr.bf16.mxu1 %v4886_v55  ;;  %v4907_v55 = vld [vmem:[#allocation6 + $0x1ac] ss:$16 sps:$4 sm:$0xff]  }
 0x28f   :  { %3242 = vmatpush1.bf16.msra.mxu1 %v4884_v54  ;;  %v4899_v54 = vld [vmem:[#allocation6 + $0x1c8] ss:$16 sps:$4 sm:$0xff]  }
 0x290   :  { %3243 = vmatprep.subr.bf16.mxu1 %v4892_v57  ;;  %v4905_v57 = vld [vmem:[#allocation6 + $0x1a8] ss:$16 sps:$4 sm:$0xff]  }
 0x293   :  { %3244 = vmatpush2.bf16.msra.mxu1 %v4890_v56  ;;  %v1575_v56 = vrot.slane %v5432_v18, %v5385_v59 }
 0x294   :  { %3245 = vmatprep.subr.bf16.mxu1 %v4898_v61  ;;  %v1579_v61 = vrot.slane %v5432_v18, %v5394_v63 }
 0x297   :  { %3246 = vmatpush2.bf16.msra.mxu1 %v4896_v58  ;;  %v4913_v58 = vld [vmem:[#allocation6 + $0x18c] ss:$16 sps:$4 sm:$0xff]  }
 0x298   :  { %3247 = vmatprep.subr.bf16.mxu1 %v4904_v1  ;;  %v4911_v1 = vld [vmem:[#allocation6 + $0x188] ss:$16 sps:$4 sm:$0xff]  }
 0x29b   :  { %3248 = vmatpush2.bf16.msra.mxu1 %v4902_v0 }
 0x29c   :  { %3249 = vmatprep.subr.bf16.mxu1 %v4910_v2 }
 0x29f   :  { %3250 = vmatpush2.bf16.msra.mxu1 %v4908_v4 }
 0x2a0   :  { %3251 = vmatprep.subr.bf16.mxu1 %v4916_v6 }
 0x2a3   :  { %3252 = vmatpush2.bf16.msra.mxu1 %v4914_v8  ;;  %v4917_v8 = vld [vmem:[#allocation6 + $0x168] ss:$16 sps:$4 sm:$0xff]  }
 0x2a4   :  { %3253 = vmatprep.subr.bf16.mxu1 %v4922_v10  ;;  %v4925_v10 = vld [vmem:[#allocation6 + $0x14c] ss:$16 sps:$4 sm:$0xff]  }
 0x2a7   :  { %3254 = vmatpush2.bf16.msra.mxu1 %v4920_v11 }
 0x2a8   :  { %3255 = vmatprep.subr.bf16.mxu1 %v4928_v13  ;;  %v4923_v13 = vld [vmem:[#allocation6 + $0x148] ss:$16 sps:$4 sm:$0xff]  }
 0x2ab   :  { %3256 = vmatpush2.bf16.msra.mxu1 %v4926_v14  ;;  %v4931_v14 = vld [vmem:[#allocation6 + $0x12c] ss:$16 sps:$4 sm:$0xff]  }
 0x2ac   :  { %3257 = vmatprep.subr.bf16.mxu1 %v4934_v15  ;;  %v4929_v15 = vld [vmem:[#allocation6 + $0x128] ss:$16 sps:$4 sm:$0xff]  }
 0x2af   :  { %3258 = vmatpush2.bf16.msra.mxu1 %v4932_v16  ;;  %v4937_v16 = vld [vmem:[#allocation6 + $0x10c] ss:$16 sps:$4 sm:$0xff]  }
 0x2b0   :  { %3309 = vmatprep.subr.bf16.mxu1 %v4940_v17  ;;  %v4935_v17 = vld [vmem:[#allocation6 + $0x108] ss:$16 sps:$4 sm:$0xff]  }
 0x2b1   :  { %v2258_v3 = vpop.f32.mrf.mxu0 }
 0x2b2   :  { %v2259_v22 = vadd.f32 %v2258_v3, %v1567_v20  ;;  %v4919_v3 = vld [vmem:[#allocation6 + $0x16c] ss:$16 sps:$4 sm:$0xff]  }
 0x2b3   :  { %v2260_v5 = vpop.f32.mrf.mxu0 }
 0x2b4   :  { %v2261_v25 = vadd.f32 %v2260_v5, %v1571_v21 }
 0x2b5   :  { %v2262_v7 = vpop.f32.mrf.mxu0 }
 0x2b7   :  { %v2263_v9 = vpop.f32.mrf.mxu0 }
 0x2f1   :  { %v2299_v23 = vpop.f32.mrf.mxu1  ;;  %v5438_v24 = vpop.f32.mrf.mxu0 }
 0x2f2   :  { %v2300_v26 = vadd.f32 %v2299_v23, %v2259_v22  ;;  %v2341_v0 = vadd.f32 %v5438_v24, %v1575_v56  ;;  %v4938_v22 = vld [vmem:[#allocation6 + $0x2e8] ss:$16 sps:$4 sm:$0xff]   ;;  %v4943_v24 = vld [vmem:[#allocation6 + $0x2cc] ss:$16 sps:$4 sm:$0xff]  }
 0x2f3   :  { %v2301_v27 = vpop.f32.mrf.mxu1  ;;  %v5440_v28 = vpop.f32.mrf.mxu0  ;;  %v4970_v56 = vld [vmem:[#allocation6 + $0x3ac] ss:$16 sps:$4 sm:$0xff]  }
 0x2f4   :  { %v2302_v29 = vadd.f32 %v2301_v27, %v2261_v25  ;;  %5090 = vtanh.f32 %v2300_v26  ;;  %v2343_v4 = vadd.f32 %v5440_v28, %v1579_v61  ;;  %v4941_v25 = vld [vmem:[#allocation6 + $0x2c8] ss:$16 sps:$4 sm:$0xff]   ;;  %v4946_v26 = vld [vmem:[#allocation6 + $0x2ac] ss:$16 sps:$4 sm:$0xff]  }
 0x2f5   :  { %v2303_v30 = vpop.f32.mrf.mxu1  ;;  %v2344_v31 = vpop.f32.mrf.mxu0  ;;  %v4944_v27 = vld [vmem:[#allocation6 + $0x2a8] ss:$16 sps:$4 sm:$0xff]   ;;  %v4949_v28 = vld [vmem:[#allocation6 + $0x28c] ss:$16 sps:$4 sm:$0xff]  }
 0x2f6   :  { %5092 = vtanh.f32 %v2302_v29  ;;  %v4986_v29 = vld [vmem:[%s5676_s9 + $0x70] ss:$8 sps:$4 sm:$0xff]   ;;  %v4988_v30 = vld [vmem:[%s5676_s9 + $0x74] ss:$8 sps:$4 sm:$0xff]   ;;  %v4991_v31 = vld [vmem:[%s5676_s9 + $0x64] ss:$8 sps:$4 sm:$0xff]  }
 0x2f7   :  { %v2304_v32 = vpop.f32.mrf.mxu1  ;;  %v2345_v33 = vpop.f32.mrf.mxu0  ;;  %v5010_v61 = vld [vmem:[%s5676_s9 + $0xf0] ss:$8 sps:$4 sm:$0xff]  }
 0x2f8   :  { %v4947_v32 = vld [vmem:[#allocation6 + $0x288] ss:$16 sps:$4 sm:$0xff]  }
 0x2f9   :  { %v4989_v33 = vld [vmem:[%s5676_s9 + $0x60] ss:$8 sps:$4 sm:$0xff]  }
 0x301   :  { %v5091_v34 = vpop.eup %5090 }
 0x302   :  { %v5442_v37 = vpack.c.bf16 %v5091_v34, %v5091_v34  ;;  %v4952_v34 = vld [vmem:[#allocation6 + $0x26c] ss:$16 sps:$4 sm:$0xff]  }
 0x303   :  { %v5093_v19 = vpop.eup %5092 }
 0x304   :  { %v2393_v12 = vpack.c.bf16 %v5093_v19, %v5093_v19  ;;  %v4994_v19 = vld [vmem:[%s5676_s9 + $0x54] ss:$8 sps:$4 sm:$0xff]  }
 0x306   :  { %3218 = vmatprep.mubr.bf16.mxu0 %v2393_v12 }
 0x307   :  { %3219 = vmatmul.mubr.bf16.vlgmr.msra.gmra.mxu0 %v5442_v37 }
 0x308   :  { %3269 = vmatpush1.bf16.msra.mxu0 %v4845_v35  ;;  %3300 = vmatprep.mubr.bf16.mxu0 %v2393_v12  ;;  %v4950_v12 = vld [vmem:[#allocation6 + $0x268] ss:$16 sps:$4 sm:$0xff]  }
 0x309   :  { %3270 = vmatprep.subr.bf16.mxu0 %v4853_v38  ;;  %v4992_v35 = vld [vmem:[%s5676_s9 + $0x50] ss:$8 sps:$4 sm:$0xff]   ;;  %v4997_v38 = vld [vmem:[%s5676_s9 + $0x44] ss:$8 sps:$4 sm:$0xff]  }
 0x30c   :  { %3271 = vmatpush1.bf16.msra.mxu0 %v4851_v39  ;;  %v4953_v39 = vld [vmem:[#allocation6 + $0x248] ss:$16 sps:$4 sm:$0xff]  }
 0x30d   :  { %3272 = vmatprep.subr.bf16.mxu0 %v4859_v40  ;;  %v4995_v40 = vld [vmem:[%s5676_s9 + $0x40] ss:$8 sps:$4 sm:$0xff]  }
 0x310   :  { %3273 = vmatpush1.bf16.msra.mxu0 %v4857_v36  ;;  %v4958_v36 = vld [vmem:[#allocation6 + $0x22c] ss:$16 sps:$4 sm:$0xff]  }
 0x311   :  { %3274 = vmatprep.subr.bf16.mxu0 %v4865_v41  ;;  %v5000_v41 = vld [vmem:[%s5676_s9 + $0x34] ss:$8 sps:$4 sm:$0xff]  }
 0x314   :  { %3275 = vmatpush1.bf16.msra.mxu0 %v4863_v42  ;;  %v4956_v42 = vld [vmem:[#allocation6 + $0x228] ss:$16 sps:$4 sm:$0xff]  }
 0x315   :  { %3276 = vmatprep.subr.bf16.mxu0 %v4871_v43  ;;  %v4998_v43 = vld [vmem:[%s5676_s9 + $0x30] ss:$8 sps:$4 sm:$0xff]  }
 0x318   :  { %3277 = vmatpush1.bf16.msra.mxu0 %v4869_v44  ;;  %v4961_v44 = vld [vmem:[#allocation6 + $0x20c] ss:$16 sps:$4 sm:$0xff]  }
 0x319   :  { %3278 = vmatprep.subr.bf16.mxu0 %v4877_v45  ;;  %v5003_v45 = vld [vmem:[%s5676_s9 + $0x24] ss:$8 sps:$4 sm:$0xff]  }
 0x31c   :  { %3279 = vmatpush1.bf16.msra.mxu0 %v4875_v46  ;;  %v4959_v46 = vld [vmem:[#allocation6 + $0x208] ss:$16 sps:$4 sm:$0xff]  }
 0x31d   :  { %3280 = vmatprep.subr.bf16.mxu0 %v4883_v48  ;;  %v5001_v48 = vld [vmem:[%s5676_s9 + $0x20] ss:$8 sps:$4 sm:$0xff]  }
 0x320   :  { %3281 = vmatpush1.bf16.msra.mxu0 %v4881_v47  ;;  %v4964_v47 = vld [vmem:[#allocation6 + $0x3ec] ss:$16 sps:$4 sm:$0xff]  }
 0x321   :  { %3282 = vmatprep.subr.bf16.mxu0 %v4889_v49  ;;  %v5006_v49 = vld [vmem:[%s5676_s9 + $0x14] ss:$8 sps:$4 sm:$0xff]  }
 0x324   :  { %3283 = vmatpush1.bf16.msra.mxu0 %v4887_v50  ;;  %v4962_v50 = vld [vmem:[#allocation6 + $0x3e8] ss:$16 sps:$4 sm:$0xff]  }
 0x325   :  { %3284 = vmatprep.subr.bf16.mxu0 %v4895_v51  ;;  %v5004_v51 = vld [vmem:[%s5676_s9 + $0x10] ss:$8 sps:$4 sm:$0xff]  }
 0x328   :  { %3285 = vmatpush2.bf16.msra.mxu0 %v4893_v52  ;;  %v4967_v52 = vld [vmem:[#allocation6 + $0x3cc] ss:$16 sps:$4 sm:$0xff]  }
 0x329   :  { %3286 = vmatprep.subr.bf16.mxu0 %v4901_v53  ;;  %v5009_v53 = vld [vmem:[%s5676_s9 + $0x4] ss:$8 sps:$4 sm:$0xff]  }
 0x32c   :  { %3287 = vmatpush2.bf16.msra.mxu0 %v4899_v54  ;;  %v4965_v54 = vld [vmem:[#allocation6 + $0x3c8] ss:$16 sps:$4 sm:$0xff]  }
 0x32d   :  { %3288 = vmatprep.subr.bf16.mxu0 %v4907_v55  ;;  %v5007_v55 = vld [vmem:[%s5676_s9] ss:$8 sps:$4 sm:$0xff]  }
 0x330   :  { %3289 = vmatpush2.bf16.msra.mxu0 %v4905_v57  ;;  %v5012_v57 = vld [vmem:[%s5676_s9 + $0xf4] ss:$8 sps:$4 sm:$0xff]  }
 0x331   :  { %v2381_v2 = vpop.f32.mrf.mxu1  ;;  %3290 = vmatprep.subr.bf16.mxu0 %v4913_v58  ;;  %v4968_v58 = vld [vmem:[#allocation6 + $0x3a8] ss:$16 sps:$4 sm:$0xff]  }
 0x332   :  { %v2382_v5 = vadd.f32 %v2381_v2, %v2341_v0  ;;  %v4973_v0 = vld [vmem:[#allocation6 + $0x38c] ss:$16 sps:$4 sm:$0xff]   ;;  %v4971_v2 = vld [vmem:[#allocation6 + $0x388] ss:$16 sps:$4 sm:$0xff]  }
 0x333   :  { %v2383_v6 = vpop.f32.mrf.mxu1 }
 0x334   :  { %v2384_v7 = vadd.f32 %v2383_v6, %v2343_v4  ;;  %3291 = vmatpush2.bf16.msra.mxu0 %v4911_v1  ;;  %5094 = vtanh.f32 %v2382_v5  ;;  %v5015_v1 = vld [vmem:[%s5676_s9 + $0xe4] ss:$8 sps:$4 sm:$0xff]   ;;  %v5018_v5 = vld [vmem:[%s5676_s9 + $0xd4] ss:$8 sps:$4 sm:$0xff]   ;;  %v4974_v6 = vld [vmem:[#allocation6 + $0x368] ss:$16 sps:$4 sm:$0xff]  }
 0x335   :  { %v2385_v9 = vpop.f32.mrf.mxu1  ;;  %3292 = vmatprep.subr.bf16.mxu0 %v4919_v3  ;;  %v5013_v3 = vld [vmem:[%s5676_s9 + $0xe0] ss:$8 sps:$4 sm:$0xff]   ;;  %v4976_v4 = vld [vmem:[#allocation6 + $0x36c] ss:$16 sps:$4 sm:$0xff]  }
 0x336   :  { %5096 = vtanh.f32 %v2384_v7  ;;  %v5016_v7 = vld [vmem:[%s5676_s9 + $0xd0] ss:$8 sps:$4 sm:$0xff]  }
 0x337   :  { %v2386_v11 = vpop.f32.mrf.mxu1  ;;  %v4977_v9 = vld [vmem:[#allocation6 + $0x348] ss:$16 sps:$4 sm:$0xff]  }
 0x338   :  { %3293 = vmatpush2.bf16.msra.mxu0 %v4917_v8  ;;  %v4979_v8 = vld [vmem:[#allocation6 + $0x34c] ss:$16 sps:$4 sm:$0xff]   ;;  %v4980_v11 = vld [vmem:[#allocation6 + $0x328] ss:$16 sps:$4 sm:$0xff]  }
 0x339   :  { %3294 = vmatprep.subr.bf16.mxu0 %v4925_v10  ;;  %v4982_v10 = vld [vmem:[#allocation6 + $0x32c] ss:$16 sps:$4 sm:$0xff]  }
 0x33c   :  { %3295 = vmatpush2.bf16.msra.mxu0 %v4923_v13  ;;  %v4985_v13 = vld [vmem:[#allocation6 + $0x30c] ss:$16 sps:$4 sm:$0xff]  }
 0x33d   :  { %3296 = vmatprep.subr.bf16.mxu0 %v4931_v14  ;;  %v4983_v14 = vld [vmem:[#allocation6 + $0x308] ss:$16 sps:$4 sm:$0xff]  }
 0x340   :  { %3297 = vmatpush2.bf16.msra.mxu0 %v4929_v15  ;;  %v5021_v15 = vld [vmem:[%s5676_s9 + $0xc4] ss:$8 sps:$4 sm:$0xff]  }
 0x341   :  { %3298 = vmatprep.subr.bf16.mxu0 %v4937_v16  ;;  %v5095_v18 = vpop.eup %5094  ;;  %v5019_v16 = vld [vmem:[%s5676_s9 + $0xc0] ss:$8 sps:$4 sm:$0xff]  }
 0x342   :  { %v5451_v23 = vpack.c.bf16 %v5095_v18, %v5095_v18  ;;  %v5022_v18 = vld [vmem:[%s5676_s9 + $0xb0] ss:$8 sps:$4 sm:$0xff]  }
 0x343   :  { %v5097_v20 = vpop.eup %5096 }
 0x344   :  { %3299 = vmatpush2.bf16.msra.mxu0 %v4935_v17  ;;  %v2395_v21 = vpack.c.bf16 %v5097_v20, %v5097_v20  ;;  %v5024_v17 = vld [vmem:[%s5676_s9 + $0xb4] ss:$8 sps:$4 sm:$0xff]   ;;  %v5027_v20 = vld [vmem:[%s5676_s9 + $0xa4] ss:$8 sps:$4 sm:$0xff]  }
 0x345   :  { %3754 = vmatprep.subr.bf16.mxu0 %v4988_v30  ;;  %v5042_v30 = vld [vmem:[%s5676_s9 + $0x154] ss:$8 sps:$4 sm:$0xff]  }
 0x346   :  { %3259 = vmatprep.mubr.bf16.mxu1 %v2395_v21 }
 0x347   :  { %3260 = vmatmul.mubr.bf16.vlgmr.msra.gmra.mxu1 %v5451_v23  ;;  %3301 = vmatmul.mubr.bf16.vlgmr.msra.gmra.mxu0 %v5442_v37  ;;  %v4955_v37 = vld [vmem:[#allocation6 + $0x24c] ss:$16 sps:$4 sm:$0xff]  }
 0x348   :  { %3310 = vmatpush1.bf16.msra.mxu1 %v4938_v22  ;;  %3341 = vmatprep.mubr.bf16.mxu1 %v2395_v21  ;;  %v5025_v21 = vld [vmem:[%s5676_s9 + $0xa0] ss:$8 sps:$4 sm:$0xff]   ;;  %v5030_v22 = vld [vmem:[%s5676_s9 + $0x94] ss:$8 sps:$4 sm:$0xff]  }
 0x349   :  { %3311 = vmatprep.subr.bf16.mxu1 %v4943_v24  ;;  %3755 = vmatpush1.bf16.msra.mxu0 %v4986_v29  ;;  %v5031_v24 = vld [vmem:[%s5676_s9 + $0x80] ss:$8 sps:$4 sm:$0xff]  }
 0x34a   :  { %3756 = vmatprep.subr.bf16.mxu0 %v4991_v31  ;;  %v5037_v29 = vld [vmem:[%s5676_s9 + $0x160] ss:$8 sps:$4 sm:$0xff]   ;;  %v5040_v31 = vld [vmem:[%s5676_s9 + $0x150] ss:$8 sps:$4 sm:$0xff]  }
 0x34c   :  { %3312 = vmatpush1.bf16.msra.mxu1 %v4941_v25  ;;  %v5033_v25 = vld [vmem:[%s5676_s9 + $0x84] ss:$8 sps:$4 sm:$0xff]  }
 0x34d   :  { %3313 = vmatprep.subr.bf16.mxu1 %v4946_v26  ;;  %3757 = vmatpush1.bf16.msra.mxu0 %v4989_v33  ;;  %v5036_v26 = vld [vmem:[%s5676_s9 + $0x174] ss:$8 sps:$4 sm:$0xff]   ;;  %v5043_v33 = vld [vmem:[%s5676_s9 + $0x140] ss:$8 sps:$4 sm:$0xff]  }
 0x34e   :  { %3758 = vmatprep.subr.bf16.mxu0 %v4994_v19  ;;  %v5046_v19 = vld [vmem:[%s5676_s9 + $0x130] ss:$8 sps:$4 sm:$0xff]  }
 0x350   :  { %3314 = vmatpush1.bf16.msra.mxu1 %v4944_v27  ;;  %v5034_v27 = vld [vmem:[%s5676_s9 + $0x170] ss:$8 sps:$4 sm:$0xff]  }
 0x351   :  { %3315 = vmatprep.subr.bf16.mxu1 %v4949_v28  ;;  %3759 = vmatpush1.bf16.msra.mxu0 %v4992_v35  ;;  %v5039_v28 = vld [vmem:[%s5676_s9 + $0x164] ss:$8 sps:$4 sm:$0xff]   ;;  %v5049_v35 = vld [vmem:[%s5676_s9 + $0x120] ss:$8 sps:$4 sm:$0xff]  }
 0x352   :  { %3760 = vmatprep.subr.bf16.mxu0 %v4997_v38  ;;  %v5052_v38 = vld [vmem:[%s5676_s9 + $0x110] ss:$8 sps:$4 sm:$0xff]  }
 0x354   :  { %3316 = vmatpush1.bf16.msra.mxu1 %v4947_v32  ;;  %v5045_v32 = vld [vmem:[%s5676_s9 + $0x144] ss:$8 sps:$4 sm:$0xff]  }
 0x355   :  { %3317 = vmatprep.subr.bf16.mxu1 %v4952_v34  ;;  %3761 = vmatpush1.bf16.msra.mxu0 %v4995_v40  ;;  %v5048_v34 = vld [vmem:[%s5676_s9 + $0x134] ss:$8 sps:$4 sm:$0xff]   ;;  %v5055_v40 = vld [vmem:[%s5676_s9 + $0x100] ss:$8 sps:$4 sm:$0xff]  }
 0x356   :  { %3762 = vmatprep.subr.bf16.mxu0 %v5000_v41  ;;  %v5058_v41 = vld [vmem:[%s5676_s9 + $0x1f0] ss:$8 sps:$4 sm:$0xff]  }
 0x358   :  { %3318 = vmatpush1.bf16.msra.mxu1 %v4950_v12  ;;  %v5051_v12 = vld [vmem:[%s5676_s9 + $0x124] ss:$8 sps:$4 sm:$0xff]  }
 0x359   :  { %3319 = vmatprep.subr.bf16.mxu1 %v4955_v37  ;;  %3763 = vmatpush1.bf16.msra.mxu0 %v4998_v43  ;;  %v5054_v37 = vld [vmem:[%s5676_s9 + $0x114] ss:$8 sps:$4 sm:$0xff]   ;;  %v5061_v43 = vld [vmem:[%s5676_s9 + $0x1e0] ss:$8 sps:$4 sm:$0xff]  }
 0x35a   :  { %3764 = vmatprep.subr.bf16.mxu0 %v5003_v45  ;;  %v5064_v45 = vld [vmem:[%s5676_s9 + $0x1d0] ss:$8 sps:$4 sm:$0xff]  }
 0x35c   :  { %3320 = vmatpush1.bf16.msra.mxu1 %v4953_v39  ;;  %v5057_v39 = vld [vmem:[%s5676_s9 + $0x104] ss:$8 sps:$4 sm:$0xff]  }
 0x35d   :  { %3321 = vmatprep.subr.bf16.mxu1 %v4958_v36  ;;  %3765 = vmatpush1.bf16.msra.mxu0 %v5001_v48  ;;  %v5060_v36 = vld [vmem:[%s5676_s9 + $0x1f4] ss:$8 sps:$4 sm:$0xff]   ;;  %v5069_v48 = vld [vmem:[%s5676_s9 + $0x1c4] ss:$8 sps:$4 sm:$0xff]  }
 0x35e   :  { %3766 = vmatprep.subr.bf16.mxu0 %v5006_v49 }
 0x360   :  { %3322 = vmatpush1.bf16.msra.mxu1 %v4956_v42  ;;  %v5063_v42 = vld [vmem:[%s5676_s9 + $0x1e4] ss:$8 sps:$4 sm:$0xff]  }
 0x361   :  { %3323 = vmatprep.subr.bf16.mxu1 %v4961_v44  ;;  %3767 = vmatpush1.bf16.msra.mxu0 %v5004_v51  ;;  %v5066_v44 = vld [vmem:[%s5676_s9 + $0x1d4] ss:$8 sps:$4 sm:$0xff]  }
 0x362   :  { %3768 = vmatprep.subr.bf16.mxu0 %v5009_v53  ;;  %v5072_v51 = vld [vmem:[%s5676_s9 + $0x1b4] ss:$8 sps:$4 sm:$0xff]  }
 0x364   :  { %3324 = vmatpush1.bf16.msra.mxu1 %v4959_v46 }
 0x365   :  { %3325 = vmatprep.subr.bf16.mxu1 %v4964_v47  ;;  %3769 = vmatpush1.bf16.msra.mxu0 %v5007_v55  ;;  %v5067_v47 = vld [vmem:[%s5676_s9 + $0x1c0] ss:$8 sps:$4 sm:$0xff]  }
 0x366   :  { %3770 = vmatprep.subr.bf16.mxu0 %v5012_v57  ;;  %v5073_v55 = vld [vmem:[%s5676_s9 + $0x1a0] ss:$8 sps:$4 sm:$0xff]   ;;  %v5076_v57 = vld [vmem:[%s5676_s9 + $0x190] ss:$8 sps:$4 sm:$0xff]  }
 0x368   :  { %3326 = vmatpush2.bf16.msra.mxu1 %v4962_v50 }
 0x369   :  { %3327 = vmatprep.subr.bf16.mxu1 %v4967_v52  ;;  %3771 = vmatpush2.bf16.msra.mxu0 %v5010_v61  ;;  %v5070_v52 = vld [vmem:[%s5676_s9 + $0x1b0] ss:$8 sps:$4 sm:$0xff]   ;;  %v5079_v61 = vld [vmem:[%s5676_s9 + $0x180] ss:$8 sps:$4 sm:$0xff]  }
 0x36a   :  { %3772 = vmatprep.subr.bf16.mxu0 %v5015_v1 }
 0x36c   :  { %3328 = vmatpush2.bf16.msra.mxu1 %v4965_v54  ;;  %v5075_v54 = vld [vmem:[%s5676_s9 + $0x1a4] ss:$8 sps:$4 sm:$0xff]  }
 0x36d   :  { %3329 = vmatprep.subr.bf16.mxu1 %v4970_v56  ;;  %3773 = vmatpush2.bf16.msra.mxu0 %v5013_v3  ;;  %v5078_v56 = vld [vmem:[%s5676_s9 + $0x194] ss:$8 sps:$4 sm:$0xff]  }
 0x36e   :  { %3774 = vmatprep.subr.bf16.mxu0 %v5018_v5 }
 0x370   :  { %3330 = vmatpush2.bf16.msra.mxu1 %v4968_v58  ;;  %v5081_v58 = vld [vmem:[%s5676_s9 + $0x184] ss:$8 sps:$4 sm:$0xff]  }
 0x371   :  { %3331 = vmatprep.subr.bf16.mxu1 %v4973_v0  ;;  %3775 = vmatpush2.bf16.msra.mxu0 %v5016_v7  ;;  %v2524_v0 = vld [vmem:[%s5675_s8] sm:$0xf] }
 0x372   :  { %3776 = vmatprep.subr.bf16.mxu0 %v5021_v15  ;;  %v2529_v1 = vrot.slane %v2524_v0, %v5387_v60 }
 0x374   :  { %3332 = vmatpush2.bf16.msra.mxu1 %v4971_v2  ;;  %v2533_v2 = vrot.slane %v2524_v0, %v5392_v62 }
 0x375   :  { %3333 = vmatprep.subr.bf16.mxu1 %v4976_v4  ;;  %3777 = vmatpush2.bf16.msra.mxu0 %v5019_v16 }
 0x376   :  { %3778 = vmatprep.subr.bf16.mxu0 %v5024_v17 }
 0x378   :  { %3334 = vmatpush2.bf16.msra.mxu1 %v4974_v6 }
 0x379   :  { %3335 = vmatprep.subr.bf16.mxu1 %v4979_v8  ;;  %3779 = vmatpush2.bf16.msra.mxu0 %v5022_v18 }
 0x37a   :  { %3780 = vmatprep.subr.bf16.mxu0 %v5027_v20 }
 0x37c   :  { %3336 = vmatpush2.bf16.msra.mxu1 %v4977_v9 }
 0x37d   :  { %3337 = vmatprep.subr.bf16.mxu1 %v4982_v10  ;;  %3781 = vmatpush2.bf16.msra.mxu0 %v5025_v21  ;;  %v2537_v21 = vrot.slane %v2524_v0, %v5385_v59 }
 0x37e   :  { %3782 = vmatprep.subr.bf16.mxu0 %v5030_v22  ;;  %v2541_v22 = vrot.slane %v2524_v0, %v5394_v63 }
 0x380   :  { %3338 = vmatpush2.bf16.msra.mxu1 %v4980_v11 }
 0x381   :  { %3339 = vmatprep.subr.bf16.mxu1 %v4985_v13 }
 0x384   :  { %3340 = vmatpush2.bf16.msra.mxu1 %v4983_v14 }
 0x385   :  { %3795 = vmatprep.subr.bf16.mxu1 %v5036_v26 }
 0x387   :  { %3342 = vmatmul.mubr.bf16.vlgmr.msra.gmra.mxu1 %v5451_v23  ;;  %v5028_v23 = vld [vmem:[%s5676_s9 + $0x90] ss:$8 sps:$4 sm:$0xff]  }
 0x388   :  { %3783 = vmatpush2.bf16.msra.mxu0 %v5028_v23  ;;  %3796 = vmatpush1.bf16.msra.mxu1 %v5034_v27 }
 0x389   :  { %3784 = vmatprep.subr.bf16.mxu0 %v5033_v25  ;;  %3797 = vmatprep.subr.bf16.mxu1 %v5039_v28 }
 0x38c   :  { %3785 = vmatpush2.bf16.msra.mxu0 %v5031_v24  ;;  %3798 = vmatpush1.bf16.msra.mxu1 %v5037_v29 }
 0x38d   :  { %3799 = vmatprep.subr.bf16.mxu1 %v5042_v30 }
 0x390   :  { %3800 = vmatpush1.bf16.msra.mxu1 %v5040_v31 }
 0x391   :  { %3801 = vmatprep.subr.bf16.mxu1 %v5045_v32 }
 0x394   :  { %3802 = vmatpush1.bf16.msra.mxu1 %v5043_v33 }
 0x395   :  { %3803 = vmatprep.subr.bf16.mxu1 %v5048_v34 }
 0x398   :  { %3804 = vmatpush1.bf16.msra.mxu1 %v5046_v19 }
 0x399   :  { %3805 = vmatprep.subr.bf16.mxu1 %v5051_v12 }
 0x39c   :  { %3806 = vmatpush1.bf16.msra.mxu1 %v5049_v35  ;;  %v3422_v35 = vld [vmem:[%s5677_s10] sm:$0x3] }
 0x39d   :  { %3807 = vmatprep.subr.bf16.mxu1 %v5054_v37  ;;  %v3427_v37 = vrot.slane %v3422_v35, %v5387_v60 }
 0x3a0   :  { %3808 = vmatpush1.bf16.msra.mxu1 %v5052_v38  ;;  %v3431_v38 = vrot.slane %v3422_v35, %v5392_v62 }
 0x3a1   :  { %3809 = vmatprep.subr.bf16.mxu1 %v5057_v39 }
 0x3a4   :  { %3810 = vmatpush1.bf16.msra.mxu1 %v5055_v40 }
 0x3a5   :  { %3811 = vmatprep.subr.bf16.mxu1 %v5060_v36 }
 0x3a8   :  { %3812 = vmatpush2.bf16.msra.mxu1 %v5058_v41 }
 0x3a9   :  { %3813 = vmatprep.subr.bf16.mxu1 %v5063_v42 }
 0x3ac   :  { %3814 = vmatpush2.bf16.msra.mxu1 %v5061_v43 }
 0x3ad   :  { %3815 = vmatprep.subr.bf16.mxu1 %v5066_v44 }
 0x3b0   :  { %3816 = vmatpush2.bf16.msra.mxu1 %v5064_v45 }
 0x3b1   :  { %3817 = vmatprep.subr.bf16.mxu1 %v5069_v48 }
 0x3b4   :  { %3818 = vmatpush2.bf16.msra.mxu1 %v5067_v47 }
 0x3b5   :  { %3819 = vmatprep.subr.bf16.mxu1 %v5072_v51 }
 0x3b8   :  { %3820 = vmatpush2.bf16.msra.mxu1 %v5070_v52 }
 0x3b9   :  { %3821 = vmatprep.subr.bf16.mxu1 %v5075_v54 }
 0x3bc   :  { %3822 = vmatpush2.bf16.msra.mxu1 %v5073_v55 }
 0x3bd   :  { %3823 = vmatprep.subr.bf16.mxu1 %v5078_v56 }
 0x3c0   :  { %3824 = vmatpush2.bf16.msra.mxu1 %v5076_v57 }
 0x3c1   :  { %3825 = vmatprep.subr.bf16.mxu1 %v5081_v58 }
 0x3c4   :  { %3826 = vmatpush2.bf16.msra.mxu1 %v5079_v61 }
 0x3c7   :  { %v3220_v46 = vpop.f32.mrf.mxu0 }
 0x3c8   :  { %v3221_v3 = vadd.f32 %v3220_v46, %v2529_v1 }
 0x3c9   :  { %v3222_v49 = vpop.f32.mrf.mxu0 }
 0x3ca   :  { %v3223_v6 = vadd.f32 %v3222_v49, %v2533_v2 }
 0x3cb   :  { %v3224_v50 = vpop.f32.mrf.mxu0 }
 0x3cd   :  { %v3225_v53 = vpop.f32.mrf.mxu0 }
 0x407   :  { %v3261_v4 = vpop.f32.mrf.mxu1  ;;  %v3302_v5 = vpop.f32.mrf.mxu0 }
 0x408   :  { %v3262_v7 = vadd.f32 %v3261_v4, %v3221_v3  ;;  %v3303_v23 = vadd.f32 %v3302_v5, %v2537_v21 }
 0x409   :  { %v3263_v8 = vpop.f32.mrf.mxu1  ;;  %v3304_v9 = vpop.f32.mrf.mxu0 }
 0x40a   :  { %v3264_v10 = vadd.f32 %v3263_v8, %v3223_v6  ;;  %5098 = vtanh.f32 %v3262_v7  ;;  %v3305_v25 = vadd.f32 %v3304_v9, %v2541_v22 }
 0x40b   :  { %v3265_v11 = vpop.f32.mrf.mxu1  ;;  %v3306_v13 = vpop.f32.mrf.mxu0 }
 0x40c   :  { %5100 = vtanh.f32 %v3264_v10 }
 0x40d   :  { %v3266_v14 = vpop.f32.mrf.mxu1  ;;  %v3307_v15 = vpop.f32.mrf.mxu0 }
 0x417   :  { %v5099_v16 = vpop.eup %5098 }
 0x418   :  { %v3354_v20 = vpack.c.bf16 %v5099_v16, %v5099_v16 }
 0x419   :  { %v5101_v17 = vpop.eup %5100 }
 0x41a   :  { %v3355_v18 = vpack.c.bf16 %v5101_v17, %v5101_v17 }
 0x41c   :  { %3786 = vmatprep.mubr.bf16.mxu0 %v3355_v18 }
 0x41d   :  { %3787 = vmatmul.mubr.bf16.vlgmr.msra.gmra.mxu0 %v3354_v20 }
 0x447   :  { %v3343_v24 = vpop.f32.mrf.mxu1 }
 0x448   :  { %v3344_v26 = vadd.f32 %v3343_v24, %v3303_v23 }
 0x449   :  { %v3345_v27 = vpop.f32.mrf.mxu1 }
 0x44a   :  { %v3346_v28 = vadd.f32 %v3345_v27, %v3305_v25  ;;  %5102 = vtanh.f32 %v3344_v26 }
 0x44b   :  { %v3347_v29 = vpop.f32.mrf.mxu1 }
 0x44c   :  { %5104 = vtanh.f32 %v3346_v28 }
 0x44d   :  { %v3348_v30 = vpop.f32.mrf.mxu1 }
 0x457   :  { %v5103_v31 = vpop.eup %5102 }
 0x458   :  { %v3356_v34 = vpack.c.bf16 %v5103_v31, %v5103_v31 }
 0x459   :  { %v5105_v32 = vpop.eup %5104 }
 0x45a   :  { %v3357_v33 = vpack.c.bf16 %v5105_v32, %v5105_v32 }
 0x45c   :  { %3827 = vmatprep.mubr.bf16.mxu1 %v3357_v33 }
 0x45d   :  { %3828 = vmatmul.mubr.bf16.vlgmr.msra.gmra.mxu1 %v3356_v34 }
 0x4dd   :  { %v3788_v19 = vpop.f32.mrf.mxu0 }
 0x4de   :  { %v3789_v39 = vadd.f32 %v3788_v19, %v3427_v37 }
 0x4df   :  { %v3790_v59 = vpop.f32.mrf.mxu0 }
 0x4e0   :  { %v3791_v36 = vadd.f32 %v3790_v59, %v3431_v38 }
 0x4e1   :  { %v3792_v12 = vpop.f32.mrf.mxu0 }
 0x4e3   :  { %v3793_v63 = vpop.f32.mrf.mxu0 }
 0x51d   :  { %v3829_v40 = vpop.f32.mrf.mxu1 }
 0x51e   :  { %v3830_v41 = vadd.f32 %v3829_v40, %v3789_v39 }
 0x51f   :  { %v3831_v42 = vpop.f32.mrf.mxu1 }
 0x520   :  { %3836 = vst [vmem:[%s5678_s11] sm:$0xff] %v3830_v41  ;;  %v3832_v43 = vadd.f32 %v3831_v42, %v3791_v36 }
 0x521   :  { %v3833_v44 = vpop.f32.mrf.mxu1 }
 0x522   :  { %3837 = vst.msk [vmem:[%s5678_s11 + $0x8] sm:$0xff] %vm366_vm2, %v3832_v43 }
 0x523   :  { %v3834_v45 = vpop.f32.mrf.mxu1 }
 0x524   :  { %3842 = vsyncpa [#allocation3], 1 }
 0x525   :  { %3843 = vsyncpa [#allocation5], 1 }

</bundles_post_ra>
